<compile_context>
chip_gen: v7x
topology: tpu7x:2x2x1
jax: 0.10.0
libtpu: 0.0.40
codegen_flags: <defaults>
</compile_context>

<pallas_src>
import jax
import jax.numpy as jnp
from jax.experimental import pallas as pl
from jax.experimental.pallas import tpu as pltpu


# ---------------------------------------------------------------------------
# small helpers (all static / trace-time)
# ---------------------------------------------------------------------------
def _round_up(n, m):
    return ((n + m - 1) // m) * m


def _cdiv(a, b):
    return (a + b - 1) // b


def _row_tile(rows, cap):
    """Rows per grid step: multiple of 8, big enough to fill the MXU rows,
    and (when possible) >= 2 grid steps so v7x's second TensorCore is used."""
    if rows <= 8:
        return 8
    return min(cap, _round_up(_cdiv(rows, 2), 8))


def _pad_rows(x, rows_padded):
    pad = rows_padded - x.shape[0]
    if pad <= 0:
        return x
    return jnp.pad(x, ((0, pad), (0, 0)))


# ---------------------------------------------------------------------------
# Pallas kernels
# ---------------------------------------------------------------------------
def _conv_pool_kernel(p0_ref, p1_ref, p2_ref, p3_ref, w_ref, b_ref, o_ref):
    """Fused conv (im2col matmul) + bias + ReLU + 2x2/2 max-pool.

    p{j}_ref : (TB, Kc)   im2col rows for pooling-window offset j
    w_ref    : (Kc, Cp)   weights, rows ordered (ki, kj, ci), cols = out chans
    b_ref    : (1, Cp)    bias
    o_ref    : (TB, Cp)   pooled activation rows (flattened n*PH*PW + h*PW + w)
    """
    w = w_ref[...]
    acc = jnp.dot(p0_ref[...], w, preferred_element_type=jnp.float32)
    for p_ref in (p1_ref, p2_ref, p3_ref):
        acc = jnp.maximum(
            acc, jnp.dot(p_ref[...], w, preferred_element_type=jnp.float32))
    # max-pool commutes with (+bias) and ReLU (both monotone): apply once.
    o_ref[...] = jnp.maximum(acc + b_ref[...], 0.0).astype(o_ref.dtype)


def _fc_chain_kernel(x_ref, w1_ref, b1_ref, w2_ref, b2_ref, w3_ref, b3_ref,
                     o_ref):
    """fc1+ReLU -> fc2+ReLU -> fc3 on one row-block; weights VMEM-resident."""
    h = jnp.dot(x_ref[...], w1_ref[...], preferred_element_type=jnp.float32)
    h = jnp.maximum(h + b1_ref[...], 0.0)
    h = jnp.dot(h, w2_ref[...], preferred_element_type=jnp.float32)
    h = jnp.maximum(h + b2_ref[...], 0.0)
    h = jnp.dot(h, w3_ref[...], preferred_element_type=jnp.float32)
    o_ref[...] = (h + b3_ref[...]).astype(o_ref.dtype)


# ---------------------------------------------------------------------------
# Layer wrappers
# ---------------------------------------------------------------------------
def conv_pool(x_nhwc, w_prepped, b_prepped, *, kernel_size=5, row_cap=512):
    """valid conv (stride 1) + bias + ReLU + 2x2/2 max pool.

    x_nhwc    : (N, H, W, Cin) f32
    w_prepped : (K*K*Cin, Cout_store) f32, rows ordered (ki, kj, ci)
    b_prepped : (1, Cout_store) f32
    returns   : (N, PH, PW, Cout_store) f32
    """
    N, H, W, Cin = x_nhwc.shape
    K = kernel_size
    Kcols, Cout_p = w_prepped.shape
    assert Kcols == K * K * Cin
    OH, OW = H - K + 1, W - K + 1
    PH, PW = OH // 2, OW // 2          # MaxPool2d(2, 2) semantics
    M = PH * PW
    R = N * M

    # im2col for each of the 4 pooling-window offsets (NHWC -> plain strided
    # slice + channel concat, column order (ki, kj, ci), no K zero-padding).
    def window_patches(dy, dx):
        cols = []
        for ki in range(K):
            for kj in range(K):
                hs, ws = dy + ki, dx + kj
                cols.append(x_nhwc[:,
                                   hs:hs + 2 * (PH - 1) + 1:2,
                                   ws:ws + 2 * (PW - 1) + 1:2,
                                   :])                    # (N, PH, PW, Cin)
        return jnp.concatenate(cols, axis=-1).reshape(R, Kcols)

    TB = _row_tile(R, row_cap)
    R_pad = _round_up(R, TB)
    patches = [_pad_rows(window_patches(dy, dx), R_pad)
               for dy in (0, 1) for dx in (0, 1)]

    pspec = pl.BlockSpec((TB, Kcols), lambda i: (i, 0))
    out = pl.pallas_call(
        _conv_pool_kernel,
        out_shape=jax.ShapeDtypeStruct((R_pad, Cout_p), jnp.float32),
        grid=(R_pad // TB,),
        in_specs=[pspec, pspec, pspec, pspec,
                  pl.BlockSpec((Kcols, Cout_p), lambda i: (0, 0)),
                  pl.BlockSpec((1, Cout_p), lambda i: (0, 0))],
        out_specs=pl.BlockSpec((TB, Cout_p), lambda i: (i, 0)),
        compiler_params=pltpu.CompilerParams(
            dimension_semantics=("parallel",)),
    )(*patches, w_prepped, b_prepped)
    return out[:R].reshape(N, PH, PW, Cout_p)


def fc_chain(feat, w1, b1, w2, b2, w3, b3, *, row_cap=256):
    """feat:(N, Kin) -> (N, w3.shape[1]); batch-row-tiled, weights resident."""
    N, Kin = feat.shape
    H1, H2, H3 = w1.shape[1], w2.shape[1], w3.shape[1]
    TB = _row_tile(N, row_cap)
    N_pad = _round_up(N, TB)
    x = _pad_rows(feat, N_pad)

    def const(r, c):
        return pl.BlockSpec((r, c), lambda i: (0, 0))

    out = pl.pallas_call(
        _fc_chain_kernel,
        out_shape=jax.ShapeDtypeStruct((N_pad, H3), jnp.float32),
        grid=(N_pad // TB,),
        in_specs=[pl.BlockSpec((TB, Kin), lambda i: (i, 0)),
                  const(Kin, H1), const(1, H1),
                  const(H1, H2), const(1, H2),
                  const(H2, H3), const(1, H3)],
        out_specs=pl.BlockSpec((TB, H3), lambda i: (i, 0)),
        compiler_params=pltpu.CompilerParams(
            dimension_semantics=("parallel",)),
    )(x, w1, b1, w2, b2, w3, b3)
    return out[:N]


# ---------------------------------------------------------------------------
# Parameters (PyTorch-style uniform init) and one-time weight re-layout
# ---------------------------------------------------------------------------
C1_STORE = 8     # conv1 activation channels stored (6 real + 2 exact zeros)
C2_STORE = 16    # conv2 activation channels stored compact (all real)
FC_LANES = 128   # fc widths padded to one lane-dense vreg column


def init_params(key):
    def uniform(key, shape, fan_in):
        bound = 1.0 / jnp.sqrt(jnp.float32(fan_in))
        return jax.random.uniform(key, shape, jnp.float32, -bound, bound)

    keys = jax.random.split(key, 12)
    return {
        "conv1_w": uniform(keys[0], (6, 3, 5, 5), 3 * 5 * 5),
        "conv1_b": uniform(keys[1], (6,), 3 * 5 * 5),
        "conv2_w": uniform(keys[2], (16, 6, 5, 5), 6 * 5 * 5),
        "conv2_b": uniform(keys[3], (16,), 6 * 5 * 5),
        # fc weights stored as (in, out) == PyTorch weight.T
        "fc1_w": uniform(keys[4], (16 * 5 * 5, 120), 16 * 5 * 5),
        "fc1_b": uniform(keys[5], (120,), 16 * 5 * 5),
        "fc2_w": uniform(keys[6], (120, 84), 120),
        "fc2_b": uniform(keys[7], (84,), 120),
        "fc3_w": uniform(keys[8], (84, 4), 84),
        "fc3_b": uniform(keys[9], (4,), 84),
    }


def prepare_params(params):
    """One-time weight re-layout, hoisted OUT of the per-call forward.
    Padded rows/cols/biases are exactly zero, so padded lanes stay zero."""
    def prep_conv(w, b, cin_store, cout_store):
        Cout, Cin, K, _ = w.shape
        wt = jnp.transpose(w, (2, 3, 1, 0))            # (K, K, Cin, Cout)
        wt = jnp.pad(wt, ((0, 0), (0, 0),
                          (0, cin_store - Cin), (0, cout_store - Cout)))
        wt = wt.reshape(K * K * cin_store, cout_store).astype(jnp.float32)
        bt = jnp.pad(b, (0, cout_store - Cout)).reshape(1, cout_store)
        return wt, bt.astype(jnp.float32)

    c1w, c1b = prep_conv(params["conv1_w"], params["conv1_b"], 3, C1_STORE)
    c2w, c2b = prep_conv(params["conv2_w"], params["conv2_b"],
                         C1_STORE, C2_STORE)

    # fc1: PyTorch flattens (c, h, w); our features are in (h, w, c) order,
    # so re-order fc1's weight rows once instead of transposing activations.
    w1 = params["fc1_w"].reshape(C2_STORE, 5, 5, 120)
    w1 = jnp.transpose(w1, (1, 2, 0, 3)).reshape(25 * C2_STORE, 120)
    w1 = jnp.pad(w1, ((0, 0), (0, FC_LANES - 120))).astype(jnp.float32)
    b1 = jnp.pad(params["fc1_b"], (0, FC_LANES - 120)).reshape(1, FC_LANES)
    w2 = jnp.pad(params["fc2_w"],
                 ((0, FC_LANES - 120), (0, FC_LANES - 84))).astype(jnp.float32)
    b2 = jnp.pad(params["fc2_b"], (0, FC_LANES - 84)).reshape(1, FC_LANES)
    w3 = jnp.pad(params["fc3_w"],
                 ((0, FC_LANES - 84), (0, FC_LANES - 4))).astype(jnp.float32)
    b3 = jnp.pad(params["fc3_b"], (0, FC_LANES - 4)).reshape(1, FC_LANES)

    return {"c1w": c1w, "c1b": c1b, "c2w": c2w, "c2b": c2b,
            "w1": w1, "b1": b1.astype(jnp.float32),
            "w2": w2, "b2": b2.astype(jnp.float32),
            "w3": w3, "b3": b3.astype(jnp.float32)}


# ---------------------------------------------------------------------------
# Forward pass (matches CNN.forward)
# ---------------------------------------------------------------------------
def cnn_forward(prepped, x):
    # x: (N, 3, 32, 32) NCHW (PyTorch layout); move to NHWC once (tiny).
    N = x.shape[0]
    x = jnp.transpose(x, (0, 2, 3, 1)).astype(jnp.float32)    # (N, 32, 32, 3)

    # conv1 + ReLU + pool -> (N, 14, 14, 8); 6 real channels, 2 exact zeros.
    a1 = conv_pool(x, prepped["c1w"], prepped["c1b"])
    # conv2 + ReLU + pool -> (N, 5, 5, 16); all 16 channels real (compact).
    a2 = conv_pool(a1, prepped["c2w"], prepped["c2b"])

    feat = a2.reshape(N, 25 * C2_STORE)                       # (N, 400), (h,w,c)
    out = fc_chain(feat, prepped["w1"], prepped["b1"],
                   prepped["w2"], prepped["b2"],
                   prepped["w3"], prepped["b3"])              # (N, 128)
    return out[:, :4]


if __name__ == "__main__":
    key = jax.random.PRNGKey(0)
    pkey, xkey = jax.random.split(key)
    params = init_params(pkey)
    prepped = prepare_params(params)          # one-time, outside the jit
    # LeNet geometry needs 32x32 spatial input so fc1 sees 16*5*5 features.
    x = jax.random.normal(xkey, (2, 3, 32, 32), dtype=jnp.float32)

    out = jax.jit(cnn_forward)(prepped, x)
    out = jax.block_until_ready(out)
    assert out.shape == (2, 4) and out.dtype == jnp.float32
    print("KERNEL_OK")
</pallas_src>

<mosaic_0001>
module attributes {stable_mosaic.version = 11 : i64} {
  func.func @_conv_pool_kernel(%arg0: i32, %arg1: memref<200x75xf32, #tpu.memory_space<vmem>>, %arg2: memref<200x75xf32, #tpu.memory_space<vmem>>, %arg3: memref<200x75xf32, #tpu.memory_space<vmem>>, %arg4: memref<200x75xf32, #tpu.memory_space<vmem>>, %arg5: memref<75x8xf32, #tpu.memory_space<vmem>>, %arg6: memref<1x8xf32, #tpu.memory_space<vmem>>, %arg7: memref<200x8xf32, #tpu.memory_space<vmem>>) attributes {dimension_semantics = [#tpu.dimension_semantics<parallel>], iteration_bounds = array<i64: 2>, scalar_prefetch = 0 : i64, scratch_operands = 0 : i64, tpu.core_type = #tpu.core_type<tc>, window_params = [{transform_indices = @transform_0, window_bounds = array<i64: 200, 75>}, {transform_indices = @transform_1, window_bounds = array<i64: 200, 75>}, {transform_indices = @transform_2, window_bounds = array<i64: 200, 75>}, {transform_indices = @transform_3, window_bounds = array<i64: 200, 75>}, {pipeline_mode = #tpu.pipeline_mode<synchronous>, transform_indices = @transform_4, window_bounds = array<i64: 75, 8>}, {pipeline_mode = #tpu.pipeline_mode<synchronous>, transform_indices = @transform_5, window_bounds = array<i64: 1, 8>}, {transform_indices = @transform_6, window_bounds = array<i64: 200, 8>}]} {
    %c0 = arith.constant 0 : index
    %c0_0 = arith.constant 0 : index
    %0 = vector.load %arg5[%c0, %c0_0] : memref<75x8xf32, #tpu.memory_space<vmem>>, vector<75x8xf32>
    %c0_1 = arith.constant 0 : index
    %c0_2 = arith.constant 0 : index
    %1 = vector.load %arg1[%c0_1, %c0_2] : memref<200x75xf32, #tpu.memory_space<vmem>>, vector<200x75xf32>
    %cst = arith.constant dense<0.000000e+00> : vector<200x8xf32>
    %2 = tpu.matmul %1, %0, %cst {dimension_numbers = #tpu.dot_dimension_numbers<[1], [0], [0], [1], [0, 0, 1, 1], [], []>} : vector<200x75xf32>, vector<75x8xf32>, vector<200x8xf32> -> vector<200x8xf32>
    %c0_3 = arith.constant 0 : index
    %c0_4 = arith.constant 0 : index
    %3 = vector.load %arg2[%c0_3, %c0_4] : memref<200x75xf32, #tpu.memory_space<vmem>>, vector<200x75xf32>
    %cst_5 = arith.constant dense<0.000000e+00> : vector<200x8xf32>
    %4 = tpu.matmul %3, %0, %cst_5 {dimension_numbers = #tpu.dot_dimension_numbers<[1], [0], [0], [1], [0, 0, 1, 1], [], []>} : vector<200x75xf32>, vector<75x8xf32>, vector<200x8xf32> -> vector<200x8xf32>
    %5 = arith.maximumf %2, %4 : vector<200x8xf32>
    %c0_6 = arith.constant 0 : index
    %c0_7 = arith.constant 0 : index
    %6 = vector.load %arg3[%c0_6, %c0_7] : memref<200x75xf32, #tpu.memory_space<vmem>>, vector<200x75xf32>
    %cst_8 = arith.constant dense<0.000000e+00> : vector<200x8xf32>
    %7 = tpu.matmul %6, %0, %cst_8 {dimension_numbers = #tpu.dot_dimension_numbers<[1], [0], [0], [1], [0, 0, 1, 1], [], []>} : vector<200x75xf32>, vector<75x8xf32>, vector<200x8xf32> -> vector<200x8xf32>
    %8 = arith.maximumf %5, %7 : vector<200x8xf32>
    %c0_9 = arith.constant 0 : index
    %c0_10 = arith.constant 0 : index
    %9 = vector.load %arg4[%c0_9, %c0_10] : memref<200x75xf32, #tpu.memory_space<vmem>>, vector<200x75xf32>
    %cst_11 = arith.constant dense<0.000000e+00> : vector<200x8xf32>
    %10 = tpu.matmul %9, %0, %cst_11 {dimension_numbers = #tpu.dot_dimension_numbers<[1], [0], [0], [1], [0, 0, 1, 1], [], []>} : vector<200x75xf32>, vector<75x8xf32>, vector<200x8xf32> -> vector<200x8xf32>
    %11 = arith.maximumf %8, %10 : vector<200x8xf32>
    %c0_12 = arith.constant 0 : index
    %c0_13 = arith.constant 0 : index
    %12 = vector.load %arg6[%c0_12, %c0_13] : memref<1x8xf32, #tpu.memory_space<vmem>>, vector<1x8xf32>
    %13 = vector.broadcast %12 : vector<1x8xf32> to vector<200x8xf32>
    %14 = arith.addf %11, %13 : vector<200x8xf32>
    %cst_14 = arith.constant 0.000000e+00 : f32
    %15 = vector.broadcast %cst_14 : f32 to vector<200x8xf32>
    %16 = arith.maximumf %14, %15 : vector<200x8xf32>
    %c0_15 = arith.constant 0 : index
    %c0_16 = arith.constant 0 : index
    %17 = vector.load %arg7[%c0_15, %c0_16] : memref<200x8xf32, #tpu.memory_space<vmem>>, vector<200x8xf32>
    tpu.vector_store %arg7[%c0_15, %c0_16], %16 {strides = array<i32>} : memref<200x8xf32, #tpu.memory_space<vmem>>, vector<200x8xf32>,
    return
  }
  func.func @transform_0(%arg0: i32) -> (i32, i32) {
    %c0_i32 = arith.constant 0 : i32
    %c0_i32_0 = arith.constant 0 : i32
    return %arg0, %c0_i32 : i32, i32
  }
  func.func @transform_1(%arg0: i32) -> (i32, i32) {
    %c0_i32 = arith.constant 0 : i32
    %c0_i32_0 = arith.constant 0 : i32
    return %arg0, %c0_i32 : i32, i32
  }
  func.func @transform_2(%arg0: i32) -> (i32, i32) {
    %c0_i32 = arith.constant 0 : i32
    %c0_i32_0 = arith.constant 0 : i32
    return %arg0, %c0_i32 : i32, i32
  }
  func.func @transform_3(%arg0: i32) -> (i32, i32) {
    %c0_i32 = arith.constant 0 : i32
    %c0_i32_0 = arith.constant 0 : i32
    return %arg0, %c0_i32 : i32, i32
  }
  func.func @transform_4(%arg0: i32) -> (i32, i32) {
    %c0_i32 = arith.constant 0 : i32
    %c0_i32_0 = arith.constant 0 : i32
    %c0_i32_1 = arith.constant 0 : i32
    return %c0_i32, %c0_i32_0 : i32, i32
  }
  func.func @transform_5(%arg0: i32) -> (i32, i32) {
    %c0_i32 = arith.constant 0 : i32
    %c0_i32_0 = arith.constant 0 : i32
    %c0_i32_1 = arith.constant 0 : i32
    return %c0_i32, %c0_i32_0 : i32, i32
  }
  func.func @transform_6(%arg0: i32) -> (i32, i32) {
    %c0_i32 = arith.constant 0 : i32
    %c0_i32_0 = arith.constant 0 : i32
    return %arg0, %c0_i32 : i32, i32
  }
}

module attributes {stable_mosaic.version = 11 : i64} {
  func.func @_conv_pool_kernel(%arg0: i32, %arg1: memref<32x200xf32, #tpu.memory_space<vmem>>, %arg2: memref<32x200xf32, #tpu.memory_space<vmem>>, %arg3: memref<32x200xf32, #tpu.memory_space<vmem>>, %arg4: memref<32x200xf32, #tpu.memory_space<vmem>>, %arg5: memref<200x16xf32, #tpu.memory_space<vmem>>, %arg6: memref<1x16xf32, #tpu.memory_space<vmem>>, %arg7: memref<32x16xf32, #tpu.memory_space<vmem>>) attributes {dimension_semantics = [#tpu.dimension_semantics<parallel>], iteration_bounds = array<i64: 2>, scalar_prefetch = 0 : i64, scratch_operands = 0 : i64, tpu.core_type = #tpu.core_type<tc>, window_params = [{transform_indices = @transform_0, window_bounds = array<i64: 32, 200>}, {transform_indices = @transform_1, window_bounds = array<i64: 32, 200>}, {transform_indices = @transform_2, window_bounds = array<i64: 32, 200>}, {transform_indices = @transform_3, window_bounds = array<i64: 32, 200>}, {pipeline_mode = #tpu.pipeline_mode<synchronous>, transform_indices = @transform_4, window_bounds = array<i64: 200, 16>}, {pipeline_mode = #tpu.pipeline_mode<synchronous>, transform_indices = @transform_5, window_bounds = array<i64: 1, 16>}, {transform_indices = @transform_6, window_bounds = array<i64: 32, 16>}]} {
    %c0 = arith.constant 0 : index
    %c0_0 = arith.constant 0 : index
    %0 = vector.load %arg5[%c0, %c0_0] : memref<200x16xf32, #tpu.memory_space<vmem>>, vector<200x16xf32>
    %c0_1 = arith.constant 0 : index
    %c0_2 = arith.constant 0 : index
    %1 = vector.load %arg1[%c0_1, %c0_2] : memref<32x200xf32, #tpu.memory_space<vmem>>, vector<32x200xf32>
    %cst = arith.constant dense<0.000000e+00> : vector<32x16xf32>
    %2 = tpu.matmul %1, %0, %cst {dimension_numbers = #tpu.dot_dimension_numbers<[1], [0], [0], [1], [0, 0, 1, 1], [], []>} : vector<32x200xf32>, vector<200x16xf32>, vector<32x16xf32> -> vector<32x16xf32>
    %c0_3 = arith.constant 0 : index
    %c0_4 = arith.constant 0 : index
    %3 = vector.load %arg2[%c0_3, %c0_4] : memref<32x200xf32, #tpu.memory_space<vmem>>, vector<32x200xf32>
    %cst_5 = arith.constant dense<0.000000e+00> : vector<32x16xf32>
    %4 = tpu.matmul %3, %0, %cst_5 {dimension_numbers = #tpu.dot_dimension_numbers<[1], [0], [0], [1], [0, 0, 1, 1], [], []>} : vector<32x200xf32>, vector<200x16xf32>, vector<32x16xf32> -> vector<32x16xf32>
    %5 = arith.maximumf %2, %4 : vector<32x16xf32>
    %c0_6 = arith.constant 0 : index
    %c0_7 = arith.constant 0 : index
    %6 = vector.load %arg3[%c0_6, %c0_7] : memref<32x200xf32, #tpu.memory_space<vmem>>, vector<32x200xf32>
    %cst_8 = arith.constant dense<0.000000e+00> : vector<32x16xf32>
    %7 = tpu.matmul %6, %0, %cst_8 {dimension_numbers = #tpu.dot_dimension_numbers<[1], [0], [0], [1], [0, 0, 1, 1], [], []>} : vector<32x200xf32>, vector<200x16xf32>, vector<32x16xf32> -> vector<32x16xf32>
    %8 = arith.maximumf %5, %7 : vector<32x16xf32>
    %c0_9 = arith.constant 0 : index
    %c0_10 = arith.constant 0 : index
    %9 = vector.load %arg4[%c0_9, %c0_10] : memref<32x200xf32, #tpu.memory_space<vmem>>, vector<32x200xf32>
    %cst_11 = arith.constant dense<0.000000e+00> : vector<32x16xf32>
    %10 = tpu.matmul %9, %0, %cst_11 {dimension_numbers = #tpu.dot_dimension_numbers<[1], [0], [0], [1], [0, 0, 1, 1], [], []>} : vector<32x200xf32>, vector<200x16xf32>, vector<32x16xf32> -> vector<32x16xf32>
    %11 = arith.maximumf %8, %10 : vector<32x16xf32>
    %c0_12 = arith.constant 0 : index
    %c0_13 = arith.constant 0 : index
    %12 = vector.load %arg6[%c0_12, %c0_13] : memref<1x16xf32, #tpu.memory_space<vmem>>, vector<1x16xf32>
    %13 = vector.broadcast %12 : vector<1x16xf32> to vector<32x16xf32>
    %14 = arith.addf %11, %13 : vector<32x16xf32>
    %cst_14 = arith.constant 0.000000e+00 : f32
    %15 = vector.broadcast %cst_14 : f32 to vector<32x16xf32>
    %16 = arith.maximumf %14, %15 : vector<32x16xf32>
    %c0_15 = arith.constant 0 : index
    %c0_16 = arith.constant 0 : index
    %17 = vector.load %arg7[%c0_15, %c0_16] : memref<32x16xf32, #tpu.memory_space<vmem>>, vector<32x16xf32>
    tpu.vector_store %arg7[%c0_15, %c0_16], %16 {strides = array<i32>} : memref<32x16xf32, #tpu.memory_space<vmem>>, vector<32x16xf32>,
    return
  }
  func.func @transform_0(%arg0: i32) -> (i32, i32) {
    %c0_i32 = arith.constant 0 : i32
    %c0_i32_0 = arith.constant 0 : i32
    return %arg0, %c0_i32 : i32, i32
  }
  func.func @transform_1(%arg0: i32) -> (i32, i32) {
    %c0_i32 = arith.constant 0 : i32
    %c0_i32_0 = arith.constant 0 : i32
    return %arg0, %c0_i32 : i32, i32
  }
  func.func @transform_2(%arg0: i32) -> (i32, i32) {
    %c0_i32 = arith.constant 0 : i32
    %c0_i32_0 = arith.constant 0 : i32
    return %arg0, %c0_i32 : i32, i32
  }
  func.func @transform_3(%arg0: i32) -> (i32, i32) {
    %c0_i32 = arith.constant 0 : i32
    %c0_i32_0 = arith.constant 0 : i32
    return %arg0, %c0_i32 : i32, i32
  }
  func.func @transform_4(%arg0: i32) -> (i32, i32) {
    %c0_i32 = arith.constant 0 : i32
    %c0_i32_0 = arith.constant 0 : i32
    %c0_i32_1 = arith.constant 0 : i32
    return %c0_i32, %c0_i32_0 : i32, i32
  }
  func.func @transform_5(%arg0: i32) -> (i32, i32) {
    %c0_i32 = arith.constant 0 : i32
    %c0_i32_0 = arith.constant 0 : i32
    %c0_i32_1 = arith.constant 0 : i32
    return %c0_i32, %c0_i32_0 : i32, i32
  }
  func.func @transform_6(%arg0: i32) -> (i32, i32) {
    %c0_i32 = arith.constant 0 : i32
    %c0_i32_0 = arith.constant 0 : i32
    return %arg0, %c0_i32 : i32, i32
  }
}

module attributes {stable_mosaic.version = 11 : i64} {
  func.func @_fc_chain_kernel(%arg0: i32, %arg1: memref<8x400xf32, #tpu.memory_space<vmem>>, %arg2: memref<400x128xf32, #tpu.memory_space<vmem>>, %arg3: memref<1x128xf32, #tpu.memory_space<vmem>>, %arg4: memref<128x128xf32, #tpu.memory_space<vmem>>, %arg5: memref<1x128xf32, #tpu.memory_space<vmem>>, %arg6: memref<128x128xf32, #tpu.memory_space<vmem>>, %arg7: memref<1x128xf32, #tpu.memory_space<vmem>>, %arg8: memref<8x128xf32, #tpu.memory_space<vmem>>) attributes {dimension_semantics = [#tpu.dimension_semantics<parallel>], iteration_bounds = array<i64: 1>, scalar_prefetch = 0 : i64, scratch_operands = 0 : i64, tpu.core_type = #tpu.core_type<tc>, window_params = [{transform_indices = @transform_0, window_bounds = array<i64: 8, 400>}, {pipeline_mode = #tpu.pipeline_mode<synchronous>, transform_indices = @transform_1, window_bounds = array<i64: 400, 128>}, {pipeline_mode = #tpu.pipeline_mode<synchronous>, transform_indices = @transform_2, window_bounds = array<i64: 1, 128>}, {pipeline_mode = #tpu.pipeline_mode<synchronous>, transform_indices = @transform_3, window_bounds = array<i64: 128, 128>}, {pipeline_mode = #tpu.pipeline_mode<synchronous>, transform_indices = @transform_4, window_bounds = array<i64: 1, 128>}, {pipeline_mode = #tpu.pipeline_mode<synchronous>, transform_indices = @transform_5, window_bounds = array<i64: 128, 128>}, {pipeline_mode = #tpu.pipeline_mode<synchronous>, transform_indices = @transform_6, window_bounds = array<i64: 1, 128>}, {transform_indices = @transform_7, window_bounds = array<i64: 8, 128>}]} {
    %c0 = arith.constant 0 : index
    %c0_0 = arith.constant 0 : index
    %0 = vector.load %arg1[%c0, %c0_0] : memref<8x400xf32, #tpu.memory_space<vmem>>, vector<8x400xf32>
    %c0_1 = arith.constant 0 : index
    %c0_2 = arith.constant 0 : index
    %1 = vector.load %arg2[%c0_1, %c0_2] : memref<400x128xf32, #tpu.memory_space<vmem>>, vector<400x128xf32>
    %cst = arith.constant dense<0.000000e+00> : vector<8x128xf32>
    %2 = tpu.matmul %0, %1, %cst {dimension_numbers = #tpu.dot_dimension_numbers<[1], [0], [0], [1], [0, 0, 1, 1], [], []>} : vector<8x400xf32>, vector<400x128xf32>, vector<8x128xf32> -> vector<8x128xf32>
    %c0_3 = arith.constant 0 : index
    %c0_4 = arith.constant 0 : index
    %3 = vector.load %arg3[%c0_3, %c0_4] : memref<1x128xf32, #tpu.memory_space<vmem>>, vector<1x128xf32>
    %4 = vector.broadcast %3 : vector<1x128xf32> to vector<8x128xf32>
    %5 = arith.addf %2, %4 : vector<8x128xf32>
    %cst_5 = arith.constant 0.000000e+00 : f32
    %6 = vector.broadcast %cst_5 : f32 to vector<8x128xf32>
    %7 = arith.maximumf %5, %6 : vector<8x128xf32>
    %c0_6 = arith.constant 0 : index
    %c0_7 = arith.constant 0 : index
    %8 = vector.load %arg4[%c0_6, %c0_7] : memref<128x128xf32, #tpu.memory_space<vmem>>, vector<128x128xf32>
    %cst_8 = arith.constant dense<0.000000e+00> : vector<8x128xf32>
    %9 = tpu.matmul %7, %8, %cst_8 {dimension_numbers = #tpu.dot_dimension_numbers<[1], [0], [0], [1], [0, 0, 1, 1], [], []>} : vector<8x128xf32>, vector<128x128xf32>, vector<8x128xf32> -> vector<8x128xf32>
    %c0_9 = arith.constant 0 : index
    %c0_10 = arith.constant 0 : index
    %10 = vector.load %arg5[%c0_9, %c0_10] : memref<1x128xf32, #tpu.memory_space<vmem>>, vector<1x128xf32>
    %11 = vector.broadcast %10 : vector<1x128xf32> to vector<8x128xf32>
    %12 = arith.addf %9, %11 : vector<8x128xf32>
    %cst_11 = arith.constant 0.000000e+00 : f32
    %13 = vector.broadcast %cst_11 : f32 to vector<8x128xf32>
    %14 = arith.maximumf %12, %13 : vector<8x128xf32>
    %c0_12 = arith.constant 0 : index
    %c0_13 = arith.constant 0 : index
    %15 = vector.load %arg6[%c0_12, %c0_13] : memref<128x128xf32, #tpu.memory_space<vmem>>, vector<128x128xf32>
    %cst_14 = arith.constant dense<0.000000e+00> : vector<8x128xf32>
    %16 = tpu.matmul %14, %15, %cst_14 {dimension_numbers = #tpu.dot_dimension_numbers<[1], [0], [0], [1], [0, 0, 1, 1], [], []>} : vector<8x128xf32>, vector<128x128xf32>, vector<8x128xf32> -> vector<8x128xf32>
    %c0_15 = arith.constant 0 : index
    %c0_16 = arith.constant 0 : index
    %17 = vector.load %arg7[%c0_15, %c0_16] : memref<1x128xf32, #tpu.memory_space<vmem>>, vector<1x128xf32>
    %18 = vector.broadcast %17 : vector<1x128xf32> to vector<8x128xf32>
    %19 = arith.addf %16, %18 : vector<8x128xf32>
    %c0_17 = arith.constant 0 : index
    %c0_18 = arith.constant 0 : index
    %20 = vector.load %arg8[%c0_17, %c0_18] : memref<8x128xf32, #tpu.memory_space<vmem>>, vector<8x128xf32>
    tpu.vector_store %arg8[%c0_17, %c0_18], %19 {strides = array<i32>} : memref<8x128xf32, #tpu.memory_space<vmem>>, vector<8x128xf32>,
    return
  }
  func.func @transform_0(%arg0: i32) -> (i32, i32) {
    %c0_i32 = arith.constant 0 : i32
    %c0_i32_0 = arith.constant 0 : i32
    return %arg0, %c0_i32 : i32, i32
  }
  func.func @transform_1(%arg0: i32) -> (i32, i32) {
    %c0_i32 = arith.constant 0 : i32
    %c0_i32_0 = arith.constant 0 : i32
    %c0_i32_1 = arith.constant 0 : i32
    return %c0_i32, %c0_i32_0 : i32, i32
  }
  func.func @transform_2(%arg0: i32) -> (i32, i32) {
    %c0_i32 = arith.constant 0 : i32
    %c0_i32_0 = arith.constant 0 : i32
    %c0_i32_1 = arith.constant 0 : i32
    return %c0_i32, %c0_i32_0 : i32, i32
  }
  func.func @transform_3(%arg0: i32) -> (i32, i32) {
    %c0_i32 = arith.constant 0 : i32
    %c0_i32_0 = arith.constant 0 : i32
    %c0_i32_1 = arith.constant 0 : i32
    return %c0_i32, %c0_i32_0 : i32, i32
  }
  func.func @transform_4(%arg0: i32) -> (i32, i32) {
    %c0_i32 = arith.constant 0 : i32
    %c0_i32_0 = arith.constant 0 : i32
    %c0_i32_1 = arith.constant 0 : i32
    return %c0_i32, %c0_i32_0 : i32, i32
  }
  func.func @transform_5(%arg0: i32) -> (i32, i32) {
    %c0_i32 = arith.constant 0 : i32
    %c0_i32_0 = arith.constant 0 : i32
    %c0_i32_1 = arith.constant 0 : i32
    return %c0_i32, %c0_i32_0 : i32, i32
  }
  func.func @transform_6(%arg0: i32) -> (i32, i32) {
    %c0_i32 = arith.constant 0 : i32
    %c0_i32_0 = arith.constant 0 : i32
    %c0_i32_1 = arith.constant 0 : i32
    return %c0_i32, %c0_i32_0 : i32, i32
  }
  func.func @transform_7(%arg0: i32) -> (i32, i32) {
    %c0_i32 = arith.constant 0 : i32
    %c0_i32_0 = arith.constant 0 : i32
    return %arg0, %c0_i32 : i32, i32
  }
}

</mosaic_0001>

<bundles_post_ra>
// kernel: cnn_forward.3
= control target key start
LH: loop header
LB: loop body
LE: loop exit
PB: predicated region body
PF: predicated region fallthrough
CT: control target
= control target key end

     0   :  { %s2506_s21 = smov 0   ;;  %s3316_s0 = inlined_call_operand.vmem [shape: f32[400,75], index: 0, kind: input, shape index: {}]   ;;  %s3317_s1 = inlined_call_operand.vmem [shape: f32[400,75], index: 1, kind: input, shape index: {}]   ;;  %s3318_s2 = inlined_call_operand.vmem [shape: f32[400,75], index: 2, kind: input, shape index: {}]   ;;  %s3319_s3 = inlined_call_operand.vmem [shape: f32[400,75], index: 3, kind: input, shape index: {}]   ;;  %s3320_s4 = inlined_call_operand.vmem [shape: f32[75,8], index: 4, kind: input, shape index: {}]   ;;  %s3321_s5 = inlined_call_operand.vmem [shape: f32[1,8], index: 5, kind: input, shape index: {}]   ;;  %s3322_s6 = inlined_call_operand.vmem [shape: f32[400,8], index: 6, kind: output, shape index: {}]  }
   0x1 LB: > { %s1746_s22 = sadd.s32 4294967295, %s2465_s21   ;;  %p1750_p0 = scmp.ge.s32.totalorder %s2465_s21, 1  ;;  %s2465_s21 = sphi %s2506_s21, %s16_s21  }
   0x2   : > { %p246_p1 = scmp.lt.s32.totalorder %s2465_s21, 3 }
   0x4   : > { %p247_p2 = pnand %p1750_p0, %p246_p1 }
   0x6   : > { %250 = sbr.rel (%p247_p2) target bundleno = 452 (0x1c4), region = 44 }
   0xd   : > { %v321_v0 = vld [vmem:[%s3320_s4] sm:$0xff]  ;;  %v322_v1 = vld [vmem:[%s3320_s4 + $0x8] sm:$0xff]  ;;  %v323_v2 = vld [vmem:[%s3320_s4 + $0x10] sm:$0xff]  ;;  %v2467_v3 = vmov 0.0|0.0   ;;  %s291_s7 = smul.u32 25, %s1746_s22  ;;  %vm2468_vm0 = vmmov 0  }
   0xe   : > { %2383 = vmatprep.subr.bf16.mxu0 %v2467_v3  ;;  %v2384_v4 = vpack.c.bf16 %v322_v1, %v321_v0  ;;  %2399 = vmatprep.subr.bf16.mxu1 %v2467_v3  ;;  %v324_v5 = vld [vmem:[%s3320_s4 + $0x18] sm:$0xff]  ;;  %v2469_v6 = vmov 0.0   ;;  %v325_v8 = vld [vmem:[%s3320_s4 + $0x20] sm:$0xff]  ;;  %v326_v9 = vld [vmem:[%s3320_s4 + $0x28] sm:$0xff]  ;;  %vm432_vm1 = vcmask 1042432   ;;  %vm2470_vm2 = vmmov 1  }
   0xf   : > { %2023 = vmatprep.mubr.msk.f32.mxu0 %vm2468_vm0, %v2469_v6  ;;  %2118 = vmatprep.mubr.msk.f32.mxu1 %vm2468_vm0, %v2469_v6  ;;  %v2387_v7 = vpack.c.bf16 %v324_v5, %v323_v2  ;;  %p292_p3 = scmp.lt.s32.totalorder %s291_s7, 49  ;;  %v2390_v10 = vpack.c.bf16 %v326_v9, %v325_v8  ;;  %v327_v11 = vld [vmem:[%s3320_s4 + $0x30] sm:$0xff]  ;;  %v328_v12 = vld [vmem:[%s3320_s4 + $0x38] sm:$0xff]  ;;  %v329_v14 = vld [vmem:[%s3320_s4 + $0x40] sm:$0xff]  ;;  %vm356_vm4 = vcmask 613376   ;;  %vm1628_vm5 = vcmask 64512  }
  0x10   : > { %2385 = vmatpush3.bf16.msra.mxu0 %v2384_v4  ;;  %2401 = vmatpush3.bf16.msra.mxu1 %v2384_v4  ;;  %v2393_v13 = vpack.c.bf16 %v328_v12, %v327_v11  ;;  %v330_v15 = vld [vmem:[%s3320_s4 + $0x48] sm:$0x7]  ;;  %vm2559_vm3 = vmpackc.low %vm432_vm1, %vm2470_vm2 }
  0x11   : > { %2386 = vmatprep.subr.bf16.mxu0 %v2467_v3  ;;  %2402 = vmatprep.subr.bf16.mxu1 %v2467_v3  ;;  %s3352_s7 = smov (!%p292_p3, %s291_s7), 49  ;;  %v2396_v16 = vpack.c.bf16 %v330_v15, %v329_v14 }
  0x12   : > { %s2556_s20 = sshll.u32 %s3352_s7, 3 }
  0x13   : > { %s2568_s24 = scalar_lea.vmem %s3316_s0, %s2556_s20  ;;  %s2574_s27 = scalar_lea.vmem %s3317_s1, %s2556_s20 }
  0x14   : > { %2388 = vmatpush3.bf16.msra.mxu0 %v2387_v7  ;;  %2404 = vmatpush3.bf16.msra.mxu1 %v2387_v7  ;;  %v331_v18 = vld [vmem:[%s2568_s24] sm:$0xff]  ;;  %v332_v20 = vld [vmem:[%s2568_s24 + $0x8] sm:$0xff]  ;;  %v333_v22 = vld [vmem:[%s2568_s24 + $0x10] sm:$0xff]  ;;  %s2792_s30 = scalar_lea.vmem %s3318_s2, %s2556_s20  ;;  %s2798_s9 = scalar_lea.vmem %s3319_s3, %s2556_s20 }
  0x15   : > { %2389 = vmatprep.subr.bf16.mxu0 %v2467_v3  ;;  %2405 = vmatprep.subr.bf16.mxu1 %v2467_v3  ;;  %v626_v19 = vld [vmem:[%s2574_s27] sm:$0xff]  ;;  %v627_v21 = vld [vmem:[%s2574_s27 + $0x8] sm:$0xff]  ;;  %v628_v23 = vld [vmem:[%s2574_s27 + $0x10] sm:$0xff]  ;;  %s3168_s14 = scalar_lea.vmem %s3322_s6, %s2556_s20 }
  0x16   : > { %v334_v24 = vld [vmem:[%s2568_s24 + $0x18] sm:$0xff]  ;;  %v335_v26 = vld [vmem:[%s2568_s24 + $0x20] sm:$0xff]  ;;  %v336_v28 = vld [vmem:[%s2568_s24 + $0x28] sm:$0xff] }
  0x17   : > { %v629_v25 = vld [vmem:[%s2574_s27 + $0x18] sm:$0xff]  ;;  %v630_v27 = vld [vmem:[%s2574_s27 + $0x20] sm:$0xff]  ;;  %v631_v29 = vld [vmem:[%s2574_s27 + $0x28] sm:$0xff] }
  0x18   : > { %2391 = vmatpush3.bf16.msra.mxu0 %v2390_v10  ;;  %2407 = vmatpush3.bf16.msra.mxu1 %v2390_v10  ;;  %v337_v30 = vld [vmem:[%s2568_s24 + $0x30] sm:$0xff]  ;;  %v338_v32 = vld [vmem:[%s2568_s24 + $0x38] sm:$0xff]  ;;  %v339_v34 = vld [vmem:[%s2568_s24 + $0x40] sm:$0xff] }
  0x19   : > { %2392 = vmatprep.subr.bf16.mxu0 %v2467_v3  ;;  %2408 = vmatprep.subr.bf16.mxu1 %v2467_v3  ;;  %v632_v31 = vld [vmem:[%s2574_s27 + $0x30] sm:$0xff]  ;;  %v633_v33 = vld [vmem:[%s2574_s27 + $0x38] sm:$0xff]  ;;  %v634_v35 = vld [vmem:[%s2574_s27 + $0x40] sm:$0xff] }
  0x1a   : > { %v340_v36 = vld [vmem:[%s2568_s24 + $0x48] sm:$0xff]  ;;  %v341_v38 = vld [vmem:[%s2568_s24 + $0x50] sm:$0xff]  ;;  %v342_v40 = vld [vmem:[%s2568_s24 + $0x58] sm:$0xff] }
  0x1b   : > { %v635_v37 = vld [vmem:[%s2574_s27 + $0x48] sm:$0xff]  ;;  %v636_v39 = vld [vmem:[%s2574_s27 + $0x50] sm:$0xff]  ;;  %v637_v41 = vld [vmem:[%s2574_s27 + $0x58] sm:$0xff] }
  0x1c   : > { %2394 = vmatpush3.bf16.msra.mxu0 %v2393_v13  ;;  %2410 = vmatpush3.bf16.msra.mxu1 %v2393_v13  ;;  %v343_v42 = vld [vmem:[%s2568_s24 + $0x60] sm:$0xff]  ;;  %v344_v44 = vld [vmem:[%s2568_s24 + $0x68] sm:$0xff]  ;;  %v345_v46 = vld [vmem:[%s2568_s24 + $0x70] sm:$0xff] }
  0x1d   : > { %2395 = vmatprep.subr.bf16.mxu0 %v2467_v3  ;;  %2411 = vmatprep.subr.bf16.mxu1 %v2467_v3  ;;  %v638_v43 = vld [vmem:[%s2574_s27 + $0x60] sm:$0xff]  ;;  %v639_v45 = vld [vmem:[%s2574_s27 + $0x68] sm:$0xff]  ;;  %v640_v47 = vld [vmem:[%s2574_s27 + $0x70] sm:$0xff] }
  0x1e   : > { %v346_v48 = vld [vmem:[%s2568_s24 + $0x78] sm:$0xff]  ;;  %v347_v50 = vld [vmem:[%s2568_s24 + $0x80] sm:$0xff]  ;;  %v348_v52 = vld [vmem:[%s2568_s24 + $0x88] sm:$0xff] }
  0x1f   : > { %v641_v49 = vld [vmem:[%s2574_s27 + $0x78] sm:$0xff]  ;;  %v642_v51 = vld [vmem:[%s2574_s27 + $0x80] sm:$0xff]  ;;  %v643_v53 = vld [vmem:[%s2574_s27 + $0x88] sm:$0xff] }
  0x20   : > { %2398 = vmatpush3.bf16.msk.msra.mxu0 %vm2559_vm3, %v2396_v16  ;;  %2414 = vmatpush3.bf16.msk.msra.mxu1 %vm2559_vm3, %v2396_v16  ;;  %v349_v54 = vld [vmem:[%s2568_s24 + $0x90] sm:$0xff]  ;;  %v350_v56 = vld [vmem:[%s2568_s24 + $0x98] sm:$0xff]  ;;  %v351_v58 = vld [vmem:[%s2568_s24 + $0xa0] sm:$0xff] }
  0x21   : > { %2415 = vmatprep.subr.bf16.mxu0 %v2467_v3  ;;  %2431 = vmatprep.subr.bf16.mxu1 %v2467_v3  ;;  %v644_v55 = vld [vmem:[%s2574_s27 + $0x90] sm:$0xff]  ;;  %v645_v57 = vld [vmem:[%s2574_s27 + $0x98] sm:$0xff]  ;;  %v646_v59 = vld [vmem:[%s2574_s27 + $0xa0] sm:$0xff] }
  0x22   : > { %v352_v60 = vld [vmem:[%s2568_s24 + $0xa8] sm:$0xff]  ;;  %v353_v62 = vld [vmem:[%s2568_s24 + $0xb0] sm:$0xff]  ;;  %v354_v0 = vld [vmem:[%s2568_s24 + $0xb8] sm:$0xff] }
  0x23   : > { %2024 = vmatmul.mubr.msk.f32.vlgmr.msra.gmra.mrb[0].mxu0 %vm356_vm4, %v331_v18  ;;  %2119 = vmatmul.mubr.msk.f32.vlgmr.msra.gmra.mrb[0].mxu1 %vm356_vm4, %v626_v19  ;;  %v647_v61 = vld [vmem:[%s2574_s27 + $0xa8] sm:$0xff]  ;;  %v648_v63 = vld [vmem:[%s2574_s27 + $0xb0] sm:$0xff]  ;;  %v649_v1 = vld [vmem:[%s2574_s27 + $0xb8] sm:$0xff] }
  0x24   : > { %2417 = vmatpush3.bf16.msra.mxu0 %v2384_v4  ;;  %2026 = vmatprep.mubr.msk.f32.mxu0 %vm2468_vm0, %v2469_v6  ;;  %v355_v2 = vld [vmem:[%s2568_s24 + $0xc0] sm:$0xff]  ;;  %v1257_v8 = vld [vmem:[%s2798_s9 + $0x8] sm:$0xff]  ;;  %v943_v9 = vld [vmem:[%s2792_s30 + $0x10] sm:$0xff] }
  0x25   : > { %2433 = vmatpush3.bf16.msra.mxu1 %v2384_v4  ;;  %2121 = vmatprep.mubr.msk.f32.mxu1 %vm2468_vm0, %v2469_v6  ;;  %v941_v4 = vld [vmem:[%s2792_s30] sm:$0xff]  ;;  %v944_v11 = vld [vmem:[%s2792_s30 + $0x18] sm:$0xff]  ;;  %v946_v15 = vld [vmem:[%s2792_s30 + $0x28] sm:$0xff] }
  0x26   : > { %2418 = vmatprep.subr.bf16.mxu0 %v2467_v3  ;;  %2434 = vmatprep.subr.bf16.mxu1 %v2467_v3  ;;  %v1256_v5 = vld [vmem:[%s2798_s9] sm:$0xff]  ;;  %v1259_v12 = vld [vmem:[%s2798_s9 + $0x18] sm:$0xff]  ;;  %v947_v17 = vld [vmem:[%s2792_s30 + $0x30] sm:$0xff] }
  0x27   : > { %2027 = vmatmul.mubr.msk.f32.gmra.mrb[2].mxu0 %vm356_vm4, %v332_v20  ;;  %2122 = vmatmul.mubr.msk.f32.gmra.mrb[2].mxu1 %vm356_vm4, %v627_v21  ;;  %v1260_v14 = vld [vmem:[%s2798_s9 + $0x20] sm:$0xff]  ;;  %v1262_v18 = vld [vmem:[%s2798_s9 + $0x30] sm:$0xff]  ;;  %v948_v19 = vld [vmem:[%s2792_s30 + $0x38] sm:$0xff] }
  0x28   : > { %2029 = vmatprep.mubr.msk.f32.mxu0 %vm2468_vm0, %v2469_v6  ;;  %2124 = vmatprep.mubr.msk.f32.mxu1 %vm2468_vm0, %v2469_v6  ;;  %v1263_v20 = vld [vmem:[%s2798_s9 + $0x38] sm:$0xff]  ;;  %v949_v21 = vld [vmem:[%s2792_s30 + $0x40] sm:$0xff] }
  0x29   : > { %2420 = vmatpush3.bf16.msra.mxu0 %v2387_v7  ;;  %2436 = vmatpush3.bf16.msra.mxu1 %v2387_v7  ;;  %v942_v7 = vld [vmem:[%s2792_s30 + $0x8] sm:$0xff] }
  0x2a   : > { %2421 = vmatprep.subr.bf16.mxu0 %v2467_v3  ;;  %2437 = vmatprep.subr.bf16.mxu1 %v2467_v3 }
  0x2b   : > { %2030 = vmatmul.mubr.msk.f32.gmra.mrb[4].mxu0 %vm356_vm4, %v333_v22  ;;  %2125 = vmatmul.mubr.msk.f32.gmra.mrb[4].mxu1 %vm356_vm4, %v628_v23  ;;  %v1264_v22 = vld [vmem:[%s2798_s9 + $0x40] sm:$0xff]  ;;  %v950_v23 = vld [vmem:[%s2792_s30 + $0x48] sm:$0xff] }
  0x2c   : > { %2032 = vmatprep.mubr.msk.f32.mxu0 %vm2468_vm0, %v2469_v6  ;;  %2127 = vmatprep.mubr.msk.f32.mxu1 %vm2468_vm0, %v2469_v6 }
  0x2d   : > { %2423 = vmatpush3.bf16.msra.mxu0 %v2390_v10  ;;  %2439 = vmatpush3.bf16.msra.mxu1 %v2390_v10  ;;  %v1258_v10 = vld [vmem:[%s2798_s9 + $0x10] sm:$0xff] }
  0x2e   : > { %2424 = vmatprep.subr.bf16.mxu0 %v2467_v3  ;;  %2440 = vmatprep.subr.bf16.mxu1 %v2467_v3 }
  0x2f   : > { %2033 = vmatmul.mubr.msk.f32.gmra.mrb[6].mxu0 %vm356_vm4, %v334_v24  ;;  %2128 = vmatmul.mubr.msk.f32.gmra.mrb[6].mxu1 %vm356_vm4, %v629_v25  ;;  %v1265_v24 = vld [vmem:[%s2798_s9 + $0x48] sm:$0xff]  ;;  %v951_v25 = vld [vmem:[%s2792_s30 + $0x50] sm:$0xff] }
  0x30   : > { %2035 = vmatprep.mubr.msk.f32.mxu0 %vm2468_vm0, %v2469_v6  ;;  %2130 = vmatprep.mubr.msk.f32.mxu1 %vm2468_vm0, %v2469_v6 }
  0x31   : > { %2426 = vmatpush3.bf16.msra.mxu0 %v2393_v13  ;;  %2442 = vmatpush3.bf16.msra.mxu1 %v2393_v13  ;;  %v945_v13 = vld [vmem:[%s2792_s30 + $0x20] sm:$0xff] }
  0x32   : > { %2427 = vmatprep.subr.bf16.mxu0 %v2467_v3  ;;  %2443 = vmatprep.subr.bf16.mxu1 %v2467_v3  ;;  %v650_v3 = vld [vmem:[%s2574_s27 + $0xc0] sm:$0xff] }
  0x33   : > { %2036 = vmatmul.mubr.msk.f32.gmra.mrb[8].mxu0 %vm356_vm4, %v335_v26  ;;  %2131 = vmatmul.mubr.msk.f32.gmra.mrb[8].mxu1 %vm356_vm4, %v630_v27  ;;  %v1266_v26 = vld [vmem:[%s2798_s9 + $0x50] sm:$0xff]  ;;  %v952_v27 = vld [vmem:[%s2792_s30 + $0x58] sm:$0xff] }
  0x34   : > { %2038 = vmatprep.mubr.msk.f32.mxu0 %vm2468_vm0, %v2469_v6  ;;  %2133 = vmatprep.mubr.msk.f32.mxu1 %vm2468_vm0, %v2469_v6 }
  0x35   : > { %2430 = vmatpush3.bf16.msk.msra.mxu0 %vm2559_vm3, %v2396_v16  ;;  %2446 = vmatpush3.bf16.msk.msra.mxu1 %vm2559_vm3, %v2396_v16  ;;  %v1261_v16 = vld [vmem:[%s2798_s9 + $0x28] sm:$0xff] }
  0x37   : > { %2039 = vmatmul.mubr.msk.f32.gmra.mrb[10].mxu0 %vm356_vm4, %v336_v28  ;;  %2134 = vmatmul.mubr.msk.f32.gmra.mrb[10].mxu1 %vm356_vm4, %v631_v29  ;;  %v1267_v28 = vld [vmem:[%s2798_s9 + $0x58] sm:$0xff]  ;;  %v953_v29 = vld [vmem:[%s2792_s30 + $0x60] sm:$0xff] }
  0x38   : > { %2041 = vmatprep.mubr.msk.f32.mxu0 %vm2468_vm0, %v2469_v6  ;;  %2136 = vmatprep.mubr.msk.f32.mxu1 %vm2468_vm0, %v2469_v6 }
  0x3b   : > { %2042 = vmatmul.mubr.msk.f32.gmra.mrb[12].mxu0 %vm356_vm4, %v337_v30  ;;  %2137 = vmatmul.mubr.msk.f32.gmra.mrb[12].mxu1 %vm356_vm4, %v632_v31  ;;  %v1268_v30 = vld [vmem:[%s2798_s9 + $0x60] sm:$0xff]  ;;  %v954_v31 = vld [vmem:[%s2792_s30 + $0x68] sm:$0xff] }
  0x3c   : > { %2044 = vmatprep.mubr.msk.f32.mxu0 %vm2468_vm0, %v2469_v6  ;;  %2139 = vmatprep.mubr.msk.f32.mxu1 %vm2468_vm0, %v2469_v6 }
  0x3f   : > { %2045 = vmatmul.mubr.msk.f32.gmra.mrb[14].mxu0 %vm356_vm4, %v338_v32  ;;  %2140 = vmatmul.mubr.msk.f32.gmra.mrb[14].mxu1 %vm356_vm4, %v633_v33  ;;  %v1269_v32 = vld [vmem:[%s2798_s9 + $0x68] sm:$0xff]  ;;  %v955_v33 = vld [vmem:[%s2792_s30 + $0x70] sm:$0xff] }
  0x40   : > { %2047 = vmatprep.mubr.msk.f32.mxu0 %vm2468_vm0, %v2469_v6  ;;  %2142 = vmatprep.mubr.msk.f32.mxu1 %vm2468_vm0, %v2469_v6 }
  0x43   : > { %2048 = vmatmul.mubr.msk.f32.gmra.mrb[16].mxu0 %vm356_vm4, %v339_v34  ;;  %2143 = vmatmul.mubr.msk.f32.gmra.mrb[16].mxu1 %vm356_vm4, %v634_v35  ;;  %v1270_v34 = vld [vmem:[%s2798_s9 + $0x70] sm:$0xff]  ;;  %v956_v35 = vld [vmem:[%s2792_s30 + $0x78] sm:$0xff] }
  0x44   : > { %2050 = vmatprep.mubr.msk.f32.mxu0 %vm2468_vm0, %v2469_v6  ;;  %2145 = vmatprep.mubr.msk.f32.mxu1 %vm2468_vm0, %v2469_v6 }
  0x47   : > { %2051 = vmatmul.mubr.msk.f32.gmra.mrb[18].mxu0 %vm356_vm4, %v340_v36  ;;  %2146 = vmatmul.mubr.msk.f32.gmra.mrb[18].mxu1 %vm356_vm4, %v635_v37  ;;  %v1271_v36 = vld [vmem:[%s2798_s9 + $0x78] sm:$0xff]  ;;  %v957_v37 = vld [vmem:[%s2792_s30 + $0x80] sm:$0xff] }
  0x48   : > { %2053 = vmatprep.mubr.msk.f32.mxu0 %vm2468_vm0, %v2469_v6  ;;  %2148 = vmatprep.mubr.msk.f32.mxu1 %vm2468_vm0, %v2469_v6 }
  0x4b   : > { %2054 = vmatmul.mubr.msk.f32.gmra.mrb[20].mxu0 %vm356_vm4, %v341_v38  ;;  %2149 = vmatmul.mubr.msk.f32.gmra.mrb[20].mxu1 %vm356_vm4, %v636_v39  ;;  %v1272_v38 = vld [vmem:[%s2798_s9 + $0x80] sm:$0xff]  ;;  %v958_v39 = vld [vmem:[%s2792_s30 + $0x88] sm:$0xff] }
  0x4c   : > { %2056 = vmatprep.mubr.msk.f32.mxu0 %vm2468_vm0, %v2469_v6  ;;  %2151 = vmatprep.mubr.msk.f32.mxu1 %vm2468_vm0, %v2469_v6 }
  0x4f   : > { %2057 = vmatmul.mubr.msk.f32.gmra.mrb[22].mxu0 %vm356_vm4, %v342_v40  ;;  %2152 = vmatmul.mubr.msk.f32.gmra.mrb[22].mxu1 %vm356_vm4, %v637_v41  ;;  %v1273_v40 = vld [vmem:[%s2798_s9 + $0x88] sm:$0xff]  ;;  %v959_v41 = vld [vmem:[%s2792_s30 + $0x90] sm:$0xff] }
  0x50   : > { %2059 = vmatprep.mubr.msk.f32.mxu0 %vm2468_vm0, %v2469_v6  ;;  %2154 = vmatprep.mubr.msk.f32.mxu1 %vm2468_vm0, %v2469_v6 }
  0x53   : > { %2060 = vmatmul.mubr.msk.f32.gmra.mrb[24].mxu0 %vm356_vm4, %v343_v42  ;;  %2155 = vmatmul.mubr.msk.f32.gmra.mrb[24].mxu1 %vm356_vm4, %v638_v43  ;;  %v1274_v42 = vld [vmem:[%s2798_s9 + $0x90] sm:$0xff]  ;;  %v960_v43 = vld [vmem:[%s2792_s30 + $0x98] sm:$0xff] }
  0x54   : > { %2062 = vmatprep.mubr.msk.f32.mxu0 %vm2468_vm0, %v2469_v6  ;;  %2157 = vmatprep.mubr.msk.f32.mxu1 %vm2468_vm0, %v2469_v6 }
  0x57   : > { %2063 = vmatmul.mubr.msk.f32.gmra.mrb[26].mxu0 %vm356_vm4, %v344_v44  ;;  %2158 = vmatmul.mubr.msk.f32.gmra.mrb[26].mxu1 %vm356_vm4, %v639_v45  ;;  %v1275_v44 = vld [vmem:[%s2798_s9 + $0x98] sm:$0xff]  ;;  %v961_v45 = vld [vmem:[%s2792_s30 + $0xa0] sm:$0xff] }
  0x58   : > { %2065 = vmatprep.mubr.msk.f32.mxu0 %vm2468_vm0, %v2469_v6  ;;  %2160 = vmatprep.mubr.msk.f32.mxu1 %vm2468_vm0, %v2469_v6 }
  0x5b   : > { %2066 = vmatmul.mubr.msk.f32.gmra.mrb[28].mxu0 %vm356_vm4, %v345_v46  ;;  %2161 = vmatmul.mubr.msk.f32.gmra.mrb[28].mxu1 %vm356_vm4, %v640_v47  ;;  %v1276_v46 = vld [vmem:[%s2798_s9 + $0xa0] sm:$0xff]  ;;  %v962_v47 = vld [vmem:[%s2792_s30 + $0xa8] sm:$0xff] }
  0x5c   : > { %2068 = vmatprep.mubr.msk.f32.mxu0 %vm2468_vm0, %v2469_v6  ;;  %2163 = vmatprep.mubr.msk.f32.mxu1 %vm2468_vm0, %v2469_v6 }
  0x5f   : > { %2069 = vmatmul.mubr.msk.f32.gmra.mrb[30].mxu0 %vm356_vm4, %v346_v48  ;;  %2164 = vmatmul.mubr.msk.f32.gmra.mrb[30].mxu1 %vm356_vm4, %v641_v49  ;;  %v1277_v48 = vld [vmem:[%s2798_s9 + $0xa8] sm:$0xff]  ;;  %v963_v49 = vld [vmem:[%s2792_s30 + $0xb0] sm:$0xff] }
  0x60   : > { %2071 = vmatprep.mubr.msk.f32.mxu0 %vm2468_vm0, %v2469_v6  ;;  %2166 = vmatprep.mubr.msk.f32.mxu1 %vm2468_vm0, %v2469_v6 }
  0x63   : > { %2072 = vmatmul.mubr.msk.f32.gmra.mrb[32].mxu0 %vm356_vm4, %v347_v50  ;;  %2167 = vmatmul.mubr.msk.f32.gmra.mrb[32].mxu1 %vm356_vm4, %v642_v51  ;;  %v1278_v50 = vld [vmem:[%s2798_s9 + $0xb0] sm:$0xff]  ;;  %v964_v51 = vld [vmem:[%s2792_s30 + $0xb8] sm:$0xff] }
  0x64   : > { %2074 = vmatprep.mubr.msk.f32.mxu0 %vm2468_vm0, %v2469_v6  ;;  %2169 = vmatprep.mubr.msk.f32.mxu1 %vm2468_vm0, %v2469_v6 }
  0x67   : > { %2075 = vmatmul.mubr.msk.f32.gmra.mrb[34].mxu0 %vm356_vm4, %v348_v52  ;;  %2170 = vmatmul.mubr.msk.f32.gmra.mrb[34].mxu1 %vm356_vm4, %v643_v53  ;;  %v1279_v52 = vld [vmem:[%s2798_s9 + $0xb8] sm:$0xff]  ;;  %v965_v53 = vld [vmem:[%s2792_s30 + $0xc0] sm:$0xff] }
  0x68   : > { %2077 = vmatprep.mubr.msk.f32.mxu0 %vm2468_vm0, %v2469_v6  ;;  %2172 = vmatprep.mubr.msk.f32.mxu1 %vm2468_vm0, %v2469_v6 }
  0x6b   : > { %2078 = vmatmul.mubr.msk.f32.gmra.mrb[36].mxu0 %vm356_vm4, %v349_v54  ;;  %2173 = vmatmul.mubr.msk.f32.gmra.mrb[36].mxu1 %vm356_vm4, %v644_v55  ;;  %v1280_v54 = vld [vmem:[%s2798_s9 + $0xc0] sm:$0xff] }
  0x6c   : > { %2080 = vmatprep.mubr.msk.f32.mxu0 %vm2468_vm0, %v2469_v6  ;;  %2175 = vmatprep.mubr.msk.f32.mxu1 %vm2468_vm0, %v2469_v6 }
  0x6f   : > { %2081 = vmatmul.mubr.msk.f32.gmra.mrb[38].mxu0 %vm356_vm4, %v350_v56  ;;  %2176 = vmatmul.mubr.msk.f32.gmra.mrb[38].mxu1 %vm356_vm4, %v645_v57 }
  0x70   : > { %2083 = vmatprep.mubr.msk.f32.mxu0 %vm2468_vm0, %v2469_v6  ;;  %2178 = vmatprep.mubr.msk.f32.mxu1 %vm2468_vm0, %v2469_v6 }
  0x73   : > { %2084 = vmatmul.mubr.msk.f32.gmra.mrb[40].mxu0 %vm356_vm4, %v351_v58  ;;  %2179 = vmatmul.mubr.msk.f32.gmra.mrb[40].mxu1 %vm356_vm4, %v646_v59 }
  0x74   : > { %2086 = vmatprep.mubr.msk.f32.mxu0 %vm2468_vm0, %v2469_v6  ;;  %2181 = vmatprep.mubr.msk.f32.mxu1 %vm2468_vm0, %v2469_v6 }
  0x77   : > { %2087 = vmatmul.mubr.msk.f32.gmra.mrb[42].mxu0 %vm356_vm4, %v352_v60  ;;  %2182 = vmatmul.mubr.msk.f32.gmra.mrb[42].mxu1 %vm356_vm4, %v647_v61 }
  0x78   : > { %2089 = vmatprep.mubr.msk.f32.mxu0 %vm2468_vm0, %v2469_v6  ;;  %2184 = vmatprep.mubr.msk.f32.mxu1 %vm2468_vm0, %v2469_v6 }
  0x7b   : > { %2090 = vmatmul.mubr.msk.f32.gmra.mrb[44].mxu0 %vm356_vm4, %v353_v62  ;;  %2185 = vmatmul.mubr.msk.f32.gmra.mrb[44].mxu1 %vm356_vm4, %v648_v63 }
  0x7c   : > { %2092 = vmatprep.mubr.msk.f32.mxu0 %vm2468_vm0, %v2469_v6  ;;  %2187 = vmatprep.mubr.msk.f32.mxu1 %vm2468_vm0, %v2469_v6 }
  0x7f   : > { %2093 = vmatmul.mubr.msk.f32.gmra.mrb[46].mxu0 %vm356_vm4, %v354_v0  ;;  %2188 = vmatmul.mubr.msk.f32.gmra.mrb[46].mxu1 %vm356_vm4, %v649_v1 }
  0x80   : > { %2095 = vmatprep.mubr.msk.f32.mxu0 %vm2468_vm0, %v2469_v6  ;;  %2190 = vmatprep.mubr.msk.f32.mxu1 %vm2468_vm0, %v2469_v6 }
  0x83   : > { %2096 = vmatmul.mubr.msk.f32.gmra.mrb[48].mxu0 %vm356_vm4, %v355_v2  ;;  %2191 = vmatmul.mubr.msk.f32.gmra.mrb[48].mxu1 %vm356_vm4, %v650_v3 }
  0x84   : > { %2213 = vmatprep.mubr.msk.f32.mxu0 %vm2468_vm0, %v2469_v6  ;;  %2308 = vmatprep.mubr.msk.f32.mxu1 %vm2468_vm0, %v2469_v6 }
  0x87   : > { %2214 = vmatmul.mubr.msk.f32.vlgmr.msra.gmra.mrb[50].mxu0 %vm356_vm4, %v941_v4  ;;  %2309 = vmatmul.mubr.msk.f32.vlgmr.msra.gmra.mrb[50].mxu1 %vm356_vm4, %v1256_v5 }
  0x88   : > { %2216 = vmatprep.mubr.msk.f32.mxu0 %vm2468_vm0, %v2469_v6  ;;  %2311 = vmatprep.mubr.msk.f32.mxu1 %vm2468_vm0, %v2469_v6 }
  0x8b   : > { %2217 = vmatmul.mubr.msk.f32.gmra.mrb[52].mxu0 %vm356_vm4, %v942_v7  ;;  %2312 = vmatmul.mubr.msk.f32.gmra.mrb[52].mxu1 %vm356_vm4, %v1257_v8 }
  0x8c   : > { %2219 = vmatprep.mubr.msk.f32.mxu0 %vm2468_vm0, %v2469_v6  ;;  %2314 = vmatprep.mubr.msk.f32.mxu1 %vm2468_vm0, %v2469_v6 }
  0x8f   : > { %2220 = vmatmul.mubr.msk.f32.gmra.mrb[54].mxu0 %vm356_vm4, %v943_v9  ;;  %2315 = vmatmul.mubr.msk.f32.gmra.mrb[54].mxu1 %vm356_vm4, %v1258_v10 }
  0x90   : > { %2222 = vmatprep.mubr.msk.f32.mxu0 %vm2468_vm0, %v2469_v6  ;;  %2317 = vmatprep.mubr.msk.f32.mxu1 %vm2468_vm0, %v2469_v6 }
  0x93   : > { %2223 = vmatmul.mubr.msk.f32.gmra.mrb[56].mxu0 %vm356_vm4, %v944_v11  ;;  %2318 = vmatmul.mubr.msk.f32.gmra.mrb[56].mxu1 %vm356_vm4, %v1259_v12 }
  0x94   : > { %2225 = vmatprep.mubr.msk.f32.mxu0 %vm2468_vm0, %v2469_v6  ;;  %2320 = vmatprep.mubr.msk.f32.mxu1 %vm2468_vm0, %v2469_v6 }
  0x97   : > { %2226 = vmatmul.mubr.msk.f32.gmra.mrb[58].mxu0 %vm356_vm4, %v945_v13  ;;  %2321 = vmatmul.mubr.msk.f32.gmra.mrb[58].mxu1 %vm356_vm4, %v1260_v14 }
  0x98   : > { %2228 = vmatprep.mubr.msk.f32.mxu0 %vm2468_vm0, %v2469_v6  ;;  %2323 = vmatprep.mubr.msk.f32.mxu1 %vm2468_vm0, %v2469_v6 }
  0x9b   : > { %2229 = vmatmul.mubr.msk.f32.gmra.mrb[60].mxu0 %vm356_vm4, %v946_v15  ;;  %2324 = vmatmul.mubr.msk.f32.gmra.mrb[60].mxu1 %vm356_vm4, %v1261_v16 }
  0x9c   : > { %2231 = vmatprep.mubr.msk.f32.mxu0 %vm2468_vm0, %v2469_v6  ;;  %2326 = vmatprep.mubr.msk.f32.mxu1 %vm2468_vm0, %v2469_v6 }
  0x9f   : > { %2232 = vmatmul.mubr.msk.f32.gmra.mrb[62].mxu0 %vm356_vm4, %v947_v17  ;;  %2327 = vmatmul.mubr.msk.f32.gmra.mrb[62].mxu1 %vm356_vm4, %v1262_v18 }
  0xa0   : > { %2234 = vmatprep.mubr.msk.f32.mxu0 %vm2468_vm0, %v2469_v6  ;;  %2329 = vmatprep.mubr.msk.f32.mxu1 %vm2468_vm0, %v2469_v6 }
  0xa3   : > { %2235 = vmatmul.mubr.msk.f32.gmra.mrb[64].mxu0 %vm356_vm4, %v948_v19  ;;  %2330 = vmatmul.mubr.msk.f32.gmra.mrb[64].mxu1 %vm356_vm4, %v1263_v20 }
  0xa4   : > { %2237 = vmatprep.mubr.msk.f32.mxu0 %vm2468_vm0, %v2469_v6  ;;  %2332 = vmatprep.mubr.msk.f32.mxu1 %vm2468_vm0, %v2469_v6 }
  0xa7   : > { %2238 = vmatmul.mubr.msk.f32.gmra.mrb[66].mxu0 %vm356_vm4, %v949_v21  ;;  %2333 = vmatmul.mubr.msk.f32.gmra.mrb[66].mxu1 %vm356_vm4, %v1264_v22 }
  0xa8   : > { %2240 = vmatprep.mubr.msk.f32.mxu0 %vm2468_vm0, %v2469_v6  ;;  %2335 = vmatprep.mubr.msk.f32.mxu1 %vm2468_vm0, %v2469_v6 }
  0xab   : > { %2241 = vmatmul.mubr.msk.f32.gmra.mrb[68].mxu0 %vm356_vm4, %v950_v23  ;;  %2336 = vmatmul.mubr.msk.f32.gmra.mrb[68].mxu1 %vm356_vm4, %v1265_v24 }
  0xac   : > { %2243 = vmatprep.mubr.msk.f32.mxu0 %vm2468_vm0, %v2469_v6  ;;  %2338 = vmatprep.mubr.msk.f32.mxu1 %vm2468_vm0, %v2469_v6 }
  0xaf   : > { %2244 = vmatmul.mubr.msk.f32.gmra.mrb[70].mxu0 %vm356_vm4, %v951_v25  ;;  %2339 = vmatmul.mubr.msk.f32.gmra.mrb[70].mxu1 %vm356_vm4, %v1266_v26 }
  0xb0   : > { %2246 = vmatprep.mubr.msk.f32.mxu0 %vm2468_vm0, %v2469_v6  ;;  %2341 = vmatprep.mubr.msk.f32.mxu1 %vm2468_vm0, %v2469_v6 }
  0xb3   : > { %2247 = vmatmul.mubr.msk.f32.gmra.mrb[72].mxu0 %vm356_vm4, %v952_v27  ;;  %2342 = vmatmul.mubr.msk.f32.gmra.mrb[72].mxu1 %vm356_vm4, %v1267_v28 }
  0xb4   : > { %2249 = vmatprep.mubr.msk.f32.mxu0 %vm2468_vm0, %v2469_v6  ;;  %2344 = vmatprep.mubr.msk.f32.mxu1 %vm2468_vm0, %v2469_v6 }
  0xb7   : > { %2250 = vmatmul.mubr.msk.f32.gmra.mrb[74].mxu0 %vm356_vm4, %v953_v29  ;;  %2345 = vmatmul.mubr.msk.f32.gmra.mrb[74].mxu1 %vm356_vm4, %v1268_v30 }
  0xb8   : > { %2252 = vmatprep.mubr.msk.f32.mxu0 %vm2468_vm0, %v2469_v6  ;;  %2347 = vmatprep.mubr.msk.f32.mxu1 %vm2468_vm0, %v2469_v6 }
  0xbb   : > { %2253 = vmatmul.mubr.msk.f32.gmra.mrb[76].mxu0 %vm356_vm4, %v954_v31  ;;  %2348 = vmatmul.mubr.msk.f32.gmra.mrb[76].mxu1 %vm356_vm4, %v1269_v32 }
  0xbc   : > { %2255 = vmatprep.mubr.msk.f32.mxu0 %vm2468_vm0, %v2469_v6  ;;  %2350 = vmatprep.mubr.msk.f32.mxu1 %vm2468_vm0, %v2469_v6 }
  0xbf   : > { %2256 = vmatmul.mubr.msk.f32.gmra.mrb[78].mxu0 %vm356_vm4, %v955_v33  ;;  %2351 = vmatmul.mubr.msk.f32.gmra.mrb[78].mxu1 %vm356_vm4, %v1270_v34 }
  0xc0   : > { %2258 = vmatprep.mubr.msk.f32.mxu0 %vm2468_vm0, %v2469_v6  ;;  %2353 = vmatprep.mubr.msk.f32.mxu1 %vm2468_vm0, %v2469_v6 }
  0xc3   : > { %2259 = vmatmul.mubr.msk.f32.gmra.mrb[80].mxu0 %vm356_vm4, %v956_v35  ;;  %2354 = vmatmul.mubr.msk.f32.gmra.mrb[80].mxu1 %vm356_vm4, %v1271_v36 }
  0xc4   : > { %2261 = vmatprep.mubr.msk.f32.mxu0 %vm2468_vm0, %v2469_v6  ;;  %2356 = vmatprep.mubr.msk.f32.mxu1 %vm2468_vm0, %v2469_v6 }
  0xc7   : > { %2262 = vmatmul.mubr.msk.f32.gmra.mrb[82].mxu0 %vm356_vm4, %v957_v37  ;;  %2357 = vmatmul.mubr.msk.f32.gmra.mrb[82].mxu1 %vm356_vm4, %v1272_v38 }
  0xc8   : > { %2264 = vmatprep.mubr.msk.f32.mxu0 %vm2468_vm0, %v2469_v6  ;;  %2359 = vmatprep.mubr.msk.f32.mxu1 %vm2468_vm0, %v2469_v6 }
  0xcb   : > { %2265 = vmatmul.mubr.msk.f32.gmra.mrb[84].mxu0 %vm356_vm4, %v958_v39  ;;  %2360 = vmatmul.mubr.msk.f32.gmra.mrb[84].mxu1 %vm356_vm4, %v1273_v40 }
  0xcc   : > { %2267 = vmatprep.mubr.msk.f32.mxu0 %vm2468_vm0, %v2469_v6  ;;  %2362 = vmatprep.mubr.msk.f32.mxu1 %vm2468_vm0, %v2469_v6 }
  0xcf   : > { %2268 = vmatmul.mubr.msk.f32.gmra.mrb[86].mxu0 %vm356_vm4, %v959_v41  ;;  %2363 = vmatmul.mubr.msk.f32.gmra.mrb[86].mxu1 %vm356_vm4, %v1274_v42 }
  0xd0   : > { %2270 = vmatprep.mubr.msk.f32.mxu0 %vm2468_vm0, %v2469_v6  ;;  %2365 = vmatprep.mubr.msk.f32.mxu1 %vm2468_vm0, %v2469_v6 }
  0xd3   : > { %2271 = vmatmul.mubr.msk.f32.gmra.mrb[88].mxu0 %vm356_vm4, %v960_v43  ;;  %2366 = vmatmul.mubr.msk.f32.gmra.mrb[88].mxu1 %vm356_vm4, %v1275_v44 }
  0xd4   : > { %2273 = vmatprep.mubr.msk.f32.mxu0 %vm2468_vm0, %v2469_v6  ;;  %2368 = vmatprep.mubr.msk.f32.mxu1 %vm2468_vm0, %v2469_v6 }
  0xd7   : > { %2274 = vmatmul.mubr.msk.f32.gmra.mrb[90].mxu0 %vm356_vm4, %v961_v45  ;;  %2369 = vmatmul.mubr.msk.f32.gmra.mrb[90].mxu1 %vm356_vm4, %v1276_v46 }
  0xd8   : > { %2276 = vmatprep.mubr.msk.f32.mxu0 %vm2468_vm0, %v2469_v6  ;;  %2371 = vmatprep.mubr.msk.f32.mxu1 %vm2468_vm0, %v2469_v6 }
  0xdb   : > { %2277 = vmatmul.mubr.msk.f32.gmra.mrb[92].mxu0 %vm356_vm4, %v962_v47  ;;  %2372 = vmatmul.mubr.msk.f32.gmra.mrb[92].mxu1 %vm356_vm4, %v1277_v48 }
  0xdc   : > { %2279 = vmatprep.mubr.msk.f32.mxu0 %vm2468_vm0, %v2469_v6  ;;  %2374 = vmatprep.mubr.msk.f32.mxu1 %vm2468_vm0, %v2469_v6 }
  0xdf   : > { %2280 = vmatmul.mubr.msk.f32.gmra.mrb[94].mxu0 %vm356_vm4, %v963_v49  ;;  %2375 = vmatmul.mubr.msk.f32.gmra.mrb[94].mxu1 %vm356_vm4, %v1278_v50 }
  0xe0   : > { %2282 = vmatprep.mubr.msk.f32.mxu0 %vm2468_vm0, %v2469_v6  ;;  %2377 = vmatprep.mubr.msk.f32.mxu1 %vm2468_vm0, %v2469_v6 }
  0xe3   : > { %2283 = vmatmul.mubr.msk.f32.gmra.mrb[96].mxu0 %vm356_vm4, %v964_v51  ;;  %2378 = vmatmul.mubr.msk.f32.gmra.mrb[96].mxu1 %vm356_vm4, %v1279_v52 }
  0xe4   : > { %2285 = vmatprep.mubr.msk.f32.mxu0 %vm2468_vm0, %v2469_v6  ;;  %2380 = vmatprep.mubr.msk.f32.mxu1 %vm2468_vm0, %v2469_v6 }
  0xe7   : > { %2286 = vmatmul.mubr.msk.f32.gmra.mrb[98].mxu0 %vm356_vm4, %v965_v53  ;;  %2381 = vmatmul.mubr.msk.f32.gmra.mrb[98].mxu1 %vm356_vm4, %v1280_v54 }
  0xf6   : > { %v3002_v55 = vpop.f32.mrb[0].mxu0  ;;  %v3004_v56 = vpop.f32.mrb[0].mxu1 }
  0xf7   : > { %v2025_v57 = vpop.f32.mrb[1].mxu0  ;;  %v916_v58 = vmax.f32 %v3002_v55, %v3004_v56  ;;  %v2120_v59 = vpop.f32.mrb[1].mxu1 }
  0xfa   : > { %v3008_v60 = vpop.f32.mrb[2].mxu0  ;;  %v3010_v61 = vpop.f32.mrb[2].mxu1 }
  0xfb   : > { %v2028_v62 = vpop.f32.mrb[3].mxu0  ;;  %v917_v6 = vmax.f32 %v3008_v60, %v3010_v61  ;;  %v2123_v63 = vpop.f32.mrb[3].mxu1 }
  0xfe   : > { %v3014_v0 = vpop.f32.mrb[4].mxu0  ;;  %v3016_v1 = vpop.f32.mrb[4].mxu1 }
  0xff   : > { %v2031_v2 = vpop.f32.mrb[5].mxu0  ;;  %v2126_v4 = vpop.f32.mrb[5].mxu1  ;;  %v3327_v60 = vmax.f32 %v3014_v0, %v3016_v1 }
 0x102   : > { %v3020_v5 = vpop.f32.mrb[6].mxu0  ;;  %v3022_v7 = vpop.f32.mrb[6].mxu1 }
 0x103   : > { %v2034_v8 = vpop.f32.mrb[7].mxu0  ;;  %v2129_v10 = vpop.f32.mrb[7].mxu1 }
 0x106   : > { %v3026_v11 = vpop.f32.mrb[8].mxu0  ;;  %v3028_v12 = vpop.f32.mrb[8].mxu1 }
 0x107   : > { %v2037_v13 = vpop.f32.mrb[9].mxu0  ;;  %v2132_v15 = vpop.f32.mrb[9].mxu1 }
 0x10a   : > { %v3032_v16 = vpop.f32.mrb[10].mxu0  ;;  %v3034_v17 = vpop.f32.mrb[10].mxu1 }
 0x10b   : > { %v2040_v18 = vpop.f32.mrb[11].mxu0  ;;  %v2135_v20 = vpop.f32.mrb[11].mxu1 }
 0x10e   : > { %v3038_v21 = vpop.f32.mrb[12].mxu0  ;;  %v3040_v22 = vpop.f32.mrb[12].mxu1 }
 0x10f   : > { %v2043_v23 = vpop.f32.mrb[13].mxu0  ;;  %v2138_v25 = vpop.f32.mrb[13].mxu1 }
 0x112   : > { %v3044_v26 = vpop.f32.mrb[14].mxu0  ;;  %v3046_v27 = vpop.f32.mrb[14].mxu1 }
 0x113   : > { %v2046_v28 = vpop.f32.mrb[15].mxu0  ;;  %v2141_v30 = vpop.f32.mrb[15].mxu1 }
 0x116   : > { %v3050_v31 = vpop.f32.mrb[16].mxu0  ;;  %v3052_v32 = vpop.f32.mrb[16].mxu1 }
 0x117   : > { %v2049_v33 = vpop.f32.mrb[17].mxu0  ;;  %v2144_v35 = vpop.f32.mrb[17].mxu1 }
 0x11a   : > { %v3056_v36 = vpop.f32.mrb[18].mxu0  ;;  %v3058_v37 = vpop.f32.mrb[18].mxu1 }
 0x11b   : > { %v2052_v38 = vpop.f32.mrb[19].mxu0  ;;  %v2147_v40 = vpop.f32.mrb[19].mxu1 }
 0x11e   : > { %v3062_v41 = vpop.f32.mrb[20].mxu0  ;;  %v3064_v42 = vpop.f32.mrb[20].mxu1 }
 0x11f   : > { %v2055_v43 = vpop.f32.mrb[21].mxu0  ;;  %v2150_v45 = vpop.f32.mrb[21].mxu1 }
 0x122   : > { %v3068_v46 = vpop.f32.mrb[22].mxu0  ;;  %v3070_v47 = vpop.f32.mrb[22].mxu1 }
 0x123   : > { %v2058_v48 = vpop.f32.mrb[23].mxu0  ;;  %v2153_v50 = vpop.f32.mrb[23].mxu1 }
 0x126   : > { %v3074_v51 = vpop.f32.mrb[24].mxu0  ;;  %v3076_v52 = vpop.f32.mrb[24].mxu1 }
 0x127   : > { %v2061_v53 = vpop.f32.mrb[25].mxu0  ;;  %v2156_v57 = vpop.f32.mrb[25].mxu1 }
 0x12a   : > { %v3080_v59 = vpop.f32.mrb[26].mxu0  ;;  %v3082_v62 = vpop.f32.mrb[26].mxu1 }
 0x12b   : > { %v2064_v63 = vpop.f32.mrb[27].mxu0  ;;  %v2159_v4 = vpop.f32.mrb[27].mxu1 }
 0x12e   : > { %v3086_v8 = vpop.f32.mrb[28].mxu0  ;;  %v3088_v10 = vpop.f32.mrb[28].mxu1 }
 0x12f   : > { %v2067_v13 = vpop.f32.mrb[29].mxu0  ;;  %v2162_v18 = vpop.f32.mrb[29].mxu1 }
 0x132   : > { %v3092_v20 = vpop.f32.mrb[30].mxu0  ;;  %v3094_v23 = vpop.f32.mrb[30].mxu1 }
 0x133   : > { %v2070_v25 = vpop.f32.mrb[31].mxu0  ;;  %v2165_v30 = vpop.f32.mrb[31].mxu1 }
 0x136   : > { %v3098_v33 = vpop.f32.mrb[32].mxu0  ;;  %v3100_v35 = vpop.f32.mrb[32].mxu1 }
 0x137   : > { %v2073_v38 = vpop.f32.mrb[33].mxu0  ;;  %v2168_v43 = vpop.f32.mrb[33].mxu1 }
 0x13a   : > { %v3104_v45 = vpop.f32.mrb[34].mxu0  ;;  %v3106_v48 = vpop.f32.mrb[34].mxu1 }
 0x13b   : > { %v2076_v50 = vpop.f32.mrb[35].mxu0  ;;  %v2171_v57 = vpop.f32.mrb[35].mxu1 }
 0x13e   : > { %v3110_v63 = vpop.f32.mrb[36].mxu0  ;;  %v3112_v4 = vpop.f32.mrb[36].mxu1 }
 0x13f   : > { %v2079_v13 = vpop.f32.mrb[37].mxu0  ;;  %v2174_v25 = vpop.f32.mrb[37].mxu1 }
 0x142   : > { %v3116_v30 = vpop.f32.mrb[38].mxu0  ;;  %v3118_v38 = vpop.f32.mrb[38].mxu1 }
 0x143   : > { %v2082_v43 = vpop.f32.mrb[39].mxu0  ;;  %v2177_v40 = vpop.f32.mrb[39].mxu1 }
 0x146   : > { %v3122_v53 = vpop.f32.mrb[40].mxu0  ;;  %v3124_v57 = vpop.f32.mrb[40].mxu1 }
 0x147   : > { %v2085_v28 = vpop.f32.mrb[41].mxu0  ;;  %v2180_v15 = vpop.f32.mrb[41].mxu1 }
 0x14a   : > { %v3128_v18 = vpop.f32.mrb[42].mxu0  ;;  %v3130_v25 = vpop.f32.mrb[42].mxu1 }
 0x14b   : > { %v2088_v2 = vpop.f32.mrb[43].mxu0  ;;  %v2183_v54 = vpop.f32.mrb[43].mxu1 }
 0x14e   : > { %v3134_v50 = vpop.f32.mrb[44].mxu0  ;;  %v3136_v40 = vpop.f32.mrb[44].mxu1 }
 0x14f   : > { %v2091_v49 = vpop.f32.mrb[45].mxu0  ;;  %v2186_v44 = vpop.f32.mrb[45].mxu1 }
 0x152   : > { %v3140_v13 = vpop.f32.mrb[46].mxu0  ;;  %v3142_v15 = vpop.f32.mrb[46].mxu1 }
 0x153   : > { %v2094_v39 = vpop.f32.mrb[47].mxu0  ;;  %v2189_v34 = vpop.f32.mrb[47].mxu1 }
 0x154   : > { %v3158_v34 = vld [vmem:[%s3321_s5] ss:$0 sm:$0xff] }
 0x156   : > { %v3146_v43 = vpop.f32.mrb[48].mxu0  ;;  %v3148_v54 = vpop.f32.mrb[48].mxu1 }
 0x157   : > { %3326 = vst [vmem:[#allocation2_spill] sm:$0xff] %v3148_v54  ;;  %v2097_v29 = vpop.f32.mrb[49].mxu0  ;;  %v2192_v28 = vpop.f32.mrb[49].mxu1 }
 0x15a   : > { %v1107_v44 = vpop.f32.mrb[50].mxu0  ;;  %v1422_v24 = vpop.f32.mrb[50].mxu1 }
 0x15b   : > { %v1231_v39 = vmax.f32 %v916_v58, %v1107_v44  ;;  %v2215_v19 = vpop.f32.mrb[51].mxu0  ;;  %v2310_v14 = vpop.f32.mrb[51].mxu1 }
 0x15d   : > { %v1546_v2 = vmax.f32 %v1231_v39, %v1422_v24 }
 0x15e   : > { %v1112_v29 = vpop.f32.mrb[52].mxu0  ;;  %v1427_v9 = vpop.f32.mrb[52].mxu1 }
 0x15f   : > { %v1578_v3 = vadd.f32 %v3158_v34, %v1546_v2  ;;  %v1232_v28 = vmax.f32 %v917_v6, %v1112_v29  ;;  %v2218_v49 = vpop.f32.mrb[53].mxu0  ;;  %v2313_v54 = vpop.f32.mrb[53].mxu1 }
 0x161   : > { %v1603_v55 = vmax.f32 %v1578_v3, 0.0  ;;  %v1547_v56 = vmax.f32 %v1232_v28, %v1427_v9  ;;  %v3328_v9 = vmax.f32 %v3020_v5, %v3022_v7 }
 0x162   : > { %v1117_v58 = vpop.f32.mrb[54].mxu0  ;;  %v1432_v14 = vpop.f32.mrb[54].mxu1 }
 0x163   : > { %1629 = vst.msk [vmem:[%s3168_s14] sm:$0xff] %vm1628_vm5, %v1603_v55  ;;  %v1579_v19 = vadd.f32 %v3158_v34, %v1547_v56  ;;  %v1233_v61 = vmax.f32 %v3327_v60, %v1117_v58  ;;  %v2221_v6 = vpop.f32.mrb[55].mxu0  ;;  %v2316_v24 = vpop.f32.mrb[55].mxu1 }
 0x165   : > { %v1604_v2 = vmax.f32 %v1579_v19, 0.0  ;;  %v1548_v54 = vmax.f32 %v1233_v61, %v1432_v14  ;;  %v3329_v14 = vmax.f32 %v3026_v11, %v3028_v12 }
 0x166   : > { %v1122_v49 = vpop.f32.mrb[56].mxu0  ;;  %v1437_v44 = vpop.f32.mrb[56].mxu1 }
 0x167   : > { %1630 = vst.msk [vmem:[%s3168_s14 + $0x8] sm:$0xff] %vm1628_vm5, %v1604_v2  ;;  %v1580_v3 = vadd.f32 %v3158_v34, %v1548_v54  ;;  %v1234_v39 = vmax.f32 %v3328_v9, %v1122_v49  ;;  %v2224_v29 = vpop.f32.mrb[57].mxu0  ;;  %v2319_v28 = vpop.f32.mrb[57].mxu1  ;;  %v3330_v54 = vmax.f32 %v3032_v16, %v3034_v17 }
 0x168   : > { %v3331_v28 = vmax.f32 %v3038_v21, %v3040_v22 }
 0x169   : > { %v1605_v0 = vmax.f32 %v1580_v3, 0.0  ;;  %v1549_v1 = vmax.f32 %v1234_v39, %v1437_v44 }
 0x16a   : > { %v1127_v55 = vpop.f32.mrb[58].mxu0  ;;  %v1442_v56 = vpop.f32.mrb[58].mxu1 }
 0x16b   : > { %1631 = vst.msk [vmem:[%s3168_s14 + $0x10] sm:$0xff] %vm1628_vm5, %v1605_v0  ;;  %v1581_v58 = vadd.f32 %v3158_v34, %v1549_v1  ;;  %v1235_v19 = vmax.f32 %v3329_v14, %v1127_v55  ;;  %v2227_v60 = vpop.f32.mrb[59].mxu0  ;;  %v2322_v61 = vpop.f32.mrb[59].mxu1 }
 0x16d   : > { %v1606_v5 = vmax.f32 %v1581_v58, 0.0  ;;  %v1550_v7 = vmax.f32 %v1235_v19, %v1442_v56  ;;  %v3332_v19 = vmax.f32 %v3044_v26, %v3046_v27 }
 0x16e   : > { %v1132_v6 = vpop.f32.mrb[60].mxu0  ;;  %v1447_v24 = vpop.f32.mrb[60].mxu1 }
 0x16f   : > { %1632 = vst.msk [vmem:[%s3168_s14 + $0x18] sm:$0xff] %vm1628_vm5, %v1606_v5  ;;  %v1582_v2 = vadd.f32 %v3158_v34, %v1550_v7  ;;  %v1236_v49 = vmax.f32 %v3330_v54, %v1132_v6  ;;  %v2230_v44 = vpop.f32.mrb[61].mxu0  ;;  %v2325_v3 = vpop.f32.mrb[61].mxu1 }
 0x171   : > { %v1607_v11 = vmax.f32 %v1582_v2, 0.0  ;;  %v1551_v12 = vmax.f32 %v1236_v49, %v1447_v24  ;;  %v3333_v2 = vmax.f32 %v3050_v31, %v3052_v32 }
 0x172   : > { %v1137_v9 = vpop.f32.mrb[62].mxu0  ;;  %v1452_v39 = vpop.f32.mrb[62].mxu1 }
 0x173   : > { %1633 = vst.msk [vmem:[%s3168_s14 + $0x20] sm:$0xff] %vm1628_vm5, %v1607_v11  ;;  %v1583_v29 = vadd.f32 %v3158_v34, %v1551_v12  ;;  %v1237_v0 = vmax.f32 %v3331_v28, %v1137_v9  ;;  %v2233_v1 = vpop.f32.mrb[63].mxu0  ;;  %v2328_v55 = vpop.f32.mrb[63].mxu1  ;;  %v3334_v9 = vmax.f32 %v3056_v36, %v3058_v37 }
 0x175   : > { %v1608_v16 = vmax.f32 %v1583_v29, 0.0  ;;  %v1552_v17 = vmax.f32 %v1237_v0, %v1452_v39 }
 0x176   : > { %v1142_v56 = vpop.f32.mrb[64].mxu0  ;;  %v1457_v58 = vpop.f32.mrb[64].mxu1 }
 0x177   : > { %1634 = vst.msk [vmem:[%s3168_s14 + $0x28] sm:$0xff] %vm1628_vm5, %v1608_v16  ;;  %v1584_v14 = vadd.f32 %v3158_v34, %v1552_v17  ;;  %v1238_v60 = vmax.f32 %v3332_v19, %v1142_v56  ;;  %v2236_v61 = vpop.f32.mrb[65].mxu0  ;;  %v2331_v5 = vpop.f32.mrb[65].mxu1  ;;  %v3335_v16 = vmax.f32 %v3062_v41, %v3064_v42 }
 0x178   : > { %v3336_v61 = vmax.f32 %v3068_v46, %v3070_v47 }
 0x179   : > { %v1609_v21 = vmax.f32 %v1584_v14, 0.0  ;;  %v1553_v22 = vmax.f32 %v1238_v60, %v1457_v58 }
 0x17a   : > { %v1147_v7 = vpop.f32.mrb[66].mxu0  ;;  %v1462_v6 = vpop.f32.mrb[66].mxu1 }
 0x17b   : > { %1635 = vst.msk [vmem:[%s3168_s14 + $0x30] sm:$0xff] %vm1628_vm5, %v1609_v21  ;;  %v1585_v24 = vadd.f32 %v3158_v34, %v1553_v22  ;;  %v1239_v54 = vmax.f32 %v3333_v2, %v1147_v7  ;;  %v2239_v49 = vpop.f32.mrb[67].mxu0  ;;  %v2334_v44 = vpop.f32.mrb[67].mxu1  ;;  %v3337_v2 = vmax.f32 %v3074_v51, %v3076_v52 }
 0x17d   : > { %v1610_v26 = vmax.f32 %v1585_v24, 0.0  ;;  %v1554_v27 = vmax.f32 %v1239_v54, %v1462_v6 }
 0x17e   : > { %v1152_v3 = vpop.f32.mrb[68].mxu0  ;;  %v1467_v11 = vpop.f32.mrb[68].mxu1 }
 0x17f   : > { %1636 = vst.msk [vmem:[%s3168_s14 + $0x38] sm:$0xff] %vm1628_vm5, %v1610_v26  ;;  %v1586_v12 = vadd.f32 %v3158_v34, %v1554_v27  ;;  %v1240_v39 = vmax.f32 %v3334_v9, %v1152_v3  ;;  %v2242_v29 = vpop.f32.mrb[69].mxu0  ;;  %v2337_v28 = vpop.f32.mrb[69].mxu1 }
 0x181   : > { %v1611_v31 = vmax.f32 %v1586_v12, 0.0  ;;  %v1555_v32 = vmax.f32 %v1240_v39, %v1467_v11  ;;  %v3338_v11 = vmax.f32 %v3080_v59, %v3082_v62 }
 0x182   : > { %v1157_v0 = vpop.f32.mrb[70].mxu0  ;;  %v1472_v1 = vpop.f32.mrb[70].mxu1 }
 0x183   : > { %1637 = vst.msk [vmem:[%s3168_s14 + $0x40] sm:$0xff] %vm1628_vm5, %v1611_v31  ;;  %v1587_v55 = vadd.f32 %v3158_v34, %v1555_v32  ;;  %v1241_v17 = vmax.f32 %v3335_v16, %v1157_v0  ;;  %v2245_v56 = vpop.f32.mrb[71].mxu0  ;;  %v2340_v58 = vpop.f32.mrb[71].mxu1  ;;  %v3339_v32 = vmax.f32 %v3086_v8, %v3088_v10 }
 0x184   : > { %v3340_v58 = vmax.f32 %v3092_v20, %v3094_v23 }
 0x185   : > { %v1612_v36 = vmax.f32 %v1587_v55, 0.0  ;;  %v1556_v37 = vmax.f32 %v1241_v17, %v1472_v1 }
 0x186   : > { %v1162_v14 = vpop.f32.mrb[72].mxu0  ;;  %v1477_v19 = vpop.f32.mrb[72].mxu1 }
 0x187   : > { %1638 = vst.msk [vmem:[%s3168_s14 + $0x48] sm:$0xff] %vm1628_vm5, %v1612_v36  ;;  %v1588_v60 = vadd.f32 %v3158_v34, %v1556_v37  ;;  %v1242_v5 = vmax.f32 %v3336_v61, %v1162_v14  ;;  %v2248_v21 = vpop.f32.mrb[73].mxu0  ;;  %v2343_v22 = vpop.f32.mrb[73].mxu1 }
 0x189   : > { %v1613_v41 = vmax.f32 %v1588_v60, 0.0  ;;  %v1557_v42 = vmax.f32 %v1242_v5, %v1477_v19  ;;  %v3341_v5 = vmax.f32 %v3098_v33, %v3100_v35 }
 0x18a   : > { %v1167_v7 = vpop.f32.mrb[74].mxu0  ;;  %v1482_v6 = vpop.f32.mrb[74].mxu1 }
 0x18b   : > { %1639 = vst.msk [vmem:[%s3168_s14 + $0x50] sm:$0xff] %vm1628_vm5, %v1613_v41  ;;  %v1589_v24 = vadd.f32 %v3158_v34, %v1557_v42  ;;  %v1243_v54 = vmax.f32 %v3337_v2, %v1167_v7  ;;  %v2251_v49 = vpop.f32.mrb[75].mxu0  ;;  %v2346_v44 = vpop.f32.mrb[75].mxu1 }
 0x18d   : > { %v1614_v46 = vmax.f32 %v1589_v24, 0.0  ;;  %v1558_v47 = vmax.f32 %v1243_v54, %v1482_v6  ;;  %v3342_v24 = vmax.f32 %v3104_v45, %v3106_v48 }
 0x18e   : > { %v1172_v26 = vpop.f32.mrb[76].mxu0  ;;  %v1487_v27 = vpop.f32.mrb[76].mxu1 }
 0x18f   : > { %1640 = vst.msk [vmem:[%s3168_s14 + $0x58] sm:$0xff] %vm1628_vm5, %v1614_v46  ;;  %v1590_v3 = vadd.f32 %v3158_v34, %v1558_v47  ;;  %v1244_v12 = vmax.f32 %v3338_v11, %v1172_v26  ;;  %v2254_v9 = vpop.f32.mrb[77].mxu0  ;;  %v2349_v39 = vpop.f32.mrb[77].mxu1  ;;  %v3343_v26 = vmax.f32 %v3110_v63, %v3112_v4 }
 0x191   : > { %v1615_v51 = vmax.f32 %v1590_v3, 0.0  ;;  %v1559_v52 = vmax.f32 %v1244_v12, %v1487_v27 }
 0x192   : > { %v1177_v29 = vpop.f32.mrb[78].mxu0  ;;  %v1492_v28 = vpop.f32.mrb[78].mxu1 }
 0x193   : > { %1641 = vst.msk [vmem:[%s3168_s14 + $0x60] sm:$0xff] %vm1628_vm5, %v1615_v51  ;;  %v1591_v31 = vadd.f32 %v3158_v34, %v1559_v52  ;;  %v1245_v0 = vmax.f32 %v3339_v32, %v1177_v29  ;;  %v2257_v1 = vpop.f32.mrb[79].mxu0  ;;  %v2352_v55 = vpop.f32.mrb[79].mxu1  ;;  %v3344_v51 = vmax.f32 %v3116_v30, %v3118_v38 }
 0x194   : > { %v3345_v1 = vmax.f32 %v3122_v53, %v3124_v57 }
 0x195   : > { %v1616_v59 = vmax.f32 %v1591_v31, 0.0  ;;  %v1560_v62 = vmax.f32 %v1245_v0, %v1492_v28 }
 0x196   : > { %v1182_v16 = vpop.f32.mrb[80].mxu0  ;;  %v1497_v17 = vpop.f32.mrb[80].mxu1 }
 0x197   : > { %1642 = vst.msk [vmem:[%s3168_s14 + $0x68] sm:$0xff] %vm1628_vm5, %v1616_v59  ;;  %v1592_v56 = vadd.f32 %v3158_v34, %v1560_v62  ;;  %v1246_v36 = vmax.f32 %v3340_v58, %v1182_v16  ;;  %v2260_v37 = vpop.f32.mrb[81].mxu0  ;;  %v2355_v14 = vpop.f32.mrb[81].mxu1  ;;  %v3346_v58 = vmax.f32 %v3128_v18, %v3130_v25 }
 0x199   : > { %v1617_v8 = vmax.f32 %v1592_v56, 0.0  ;;  %v1561_v10 = vmax.f32 %v1246_v36, %v1497_v17 }
 0x19a   : > { %v1187_v19 = vpop.f32.mrb[82].mxu0  ;;  %v1502_v60 = vpop.f32.mrb[82].mxu1 }
 0x19b   : > { %1643 = vst.msk [vmem:[%s3168_s14 + $0x70] sm:$0xff] %vm1628_vm5, %v1617_v8  ;;  %v1593_v61 = vadd.f32 %v3158_v34, %v1561_v10  ;;  %v1247_v21 = vmax.f32 %v3341_v5, %v1187_v19  ;;  %v2263_v22 = vpop.f32.mrb[83].mxu0  ;;  %v2358_v41 = vpop.f32.mrb[83].mxu1 }
 0x19d   : > { %v1618_v20 = vmax.f32 %v1593_v61, 0.0  ;;  %v1562_v23 = vmax.f32 %v1247_v21, %v1502_v60  ;;  %v3347_v60 = vmax.f32 %v3134_v50, %v3136_v40 }
 0x19e   : > { %v1192_v42 = vpop.f32.mrb[84].mxu0  ;;  %v1507_v7 = vpop.f32.mrb[84].mxu1 }
 0x19f   : > { %1644 = vst.msk [vmem:[%s3168_s14 + $0x78] sm:$0xff] %vm1628_vm5, %v1618_v20  ;;  %v1594_v6 = vadd.f32 %v3158_v34, %v1562_v23  ;;  %v1248_v2 = vmax.f32 %v3342_v24, %v1192_v42  ;;  %v2266_v54 = vpop.f32.mrb[85].mxu0  ;;  %v2361_v49 = vpop.f32.mrb[85].mxu1  ;;  %v3348_v23 = vmax.f32 %v3140_v13, %v3142_v15 }
 0x1a0   : > { %v3349_v49 = vld [vmem:[#allocation2_spill] sm:$0xff] }
 0x1a1   : > { %v1619_v33 = vmax.f32 %v1594_v6, 0.0  ;;  %v1563_v35 = vmax.f32 %v1248_v2, %v1507_v7 }
 0x1a2   : > { %v1197_v44 = vpop.f32.mrb[86].mxu0  ;;  %v1512_v46 = vpop.f32.mrb[86].mxu1 }
 0x1a3   : > { %1645 = vst.msk [vmem:[%s3168_s14 + $0x80] sm:$0xff] %vm1628_vm5, %v1619_v33  ;;  %v1595_v47 = vadd.f32 %v3158_v34, %v1563_v35  ;;  %v1249_v27 = vmax.f32 %v3343_v26, %v1197_v44  ;;  %v2269_v3 = vpop.f32.mrb[87].mxu0  ;;  %v2364_v11 = vpop.f32.mrb[87].mxu1  ;;  %v3350_v33 = vmax.f32 %v3146_v43, %v3349_v49 }
 0x1a5   : > { %v1620_v45 = vmax.f32 %v1595_v47, 0.0  ;;  %v1564_v48 = vmax.f32 %v1249_v27, %v1512_v46 }
 0x1a6   : > { %v1202_v12 = vpop.f32.mrb[88].mxu0  ;;  %v1517_v9 = vpop.f32.mrb[88].mxu1 }
 0x1a7   : > { %1646 = vst.msk [vmem:[%s3168_s14 + $0x88] sm:$0xff] %vm1628_vm5, %v1620_v45  ;;  %v1596_v39 = vadd.f32 %v3158_v34, %v1564_v48  ;;  %v1250_v52 = vmax.f32 %v3344_v51, %v1202_v12  ;;  %v2272_v29 = vpop.f32.mrb[89].mxu0  ;;  %v2367_v28 = vpop.f32.mrb[89].mxu1 }
 0x1a9   : > { %v1621_v63 = vmax.f32 %v1596_v39, 0.0  ;;  %v1565_v4 = vmax.f32 %v1250_v52, %v1517_v9 }
 0x1aa   : > { %v1207_v31 = vpop.f32.mrb[90].mxu0  ;;  %v1522_v32 = vpop.f32.mrb[90].mxu1 }
 0x1ab   : > { %1647 = vst.msk [vmem:[%s3168_s14 + $0x90] sm:$0xff] %vm1628_vm5, %v1621_v63  ;;  %v1597_v0 = vadd.f32 %v3158_v34, %v1565_v4  ;;  %v1251_v55 = vmax.f32 %v3345_v1, %v1207_v31  ;;  %v2275_v59 = vpop.f32.mrb[91].mxu0  ;;  %v2370_v62 = vpop.f32.mrb[91].mxu1 }
 0x1ad   : > { %v1622_v30 = vmax.f32 %v1597_v0, 0.0  ;;  %v1566_v38 = vmax.f32 %v1251_v55, %v1522_v32 }
 0x1ae   : > { %v1212_v16 = vpop.f32.mrb[92].mxu0  ;;  %v1527_v17 = vpop.f32.mrb[92].mxu1 }
 0x1af   : > { %1648 = vst.msk [vmem:[%s3168_s14 + $0x98] sm:$0xff] %vm1628_vm5, %v1622_v30  ;;  %v1598_v56 = vadd.f32 %v3158_v34, %v1566_v38  ;;  %v1252_v36 = vmax.f32 %v3346_v58, %v1212_v16  ;;  %v2278_v37 = vpop.f32.mrb[93].mxu0  ;;  %v2373_v14 = vpop.f32.mrb[93].mxu1 }
 0x1b1   : > { %v1623_v53 = vmax.f32 %v1598_v56, 0.0  ;;  %v1567_v57 = vmax.f32 %v1252_v36, %v1527_v17 }
 0x1b2   : > { %v1217_v8 = vpop.f32.mrb[94].mxu0  ;;  %v1532_v10 = vpop.f32.mrb[94].mxu1 }
 0x1b3   : > { %1649 = vst.msk [vmem:[%s3168_s14 + $0xa0] sm:$0xff] %vm1628_vm5, %v1623_v53  ;;  %v1599_v19 = vadd.f32 %v3158_v34, %v1567_v57  ;;  %v1253_v61 = vmax.f32 %v3347_v60, %v1217_v8  ;;  %v2281_v5 = vpop.f32.mrb[95].mxu0  ;;  %v2376_v21 = vpop.f32.mrb[95].mxu1 }
 0x1b5   : > { %v1624_v18 = vmax.f32 %v1599_v19, 0.0  ;;  %v1568_v25 = vmax.f32 %v1253_v61, %v1532_v10 }
 0x1b6   : > { %v1222_v22 = vpop.f32.mrb[96].mxu0  ;;  %v1537_v41 = vpop.f32.mrb[96].mxu1 }
 0x1b7   : > { %1650 = vst.msk [vmem:[%s3168_s14 + $0xa8] sm:$0xff] %vm1628_vm5, %v1624_v18  ;;  %v1600_v20 = vadd.f32 %v3158_v34, %v1568_v25  ;;  %v1254_v42 = vmax.f32 %v3348_v23, %v1222_v22  ;;  %v2284_v7 = vpop.f32.mrb[97].mxu0  ;;  %v2379_v50 = vpop.f32.mrb[97].mxu1 }
 0x1b9   : > { %v1625_v40 = vmax.f32 %v1600_v20, 0.0  ;;  %v1569_v6 = vmax.f32 %v1254_v42, %v1537_v41 }
 0x1ba   : > { %v1227_v24 = vpop.f32.mrb[98].mxu0  ;;  %v1542_v2 = vpop.f32.mrb[98].mxu1 }
 0x1bb   : > { %1651 = vst.msk [vmem:[%s3168_s14 + $0xb0] sm:$0xff] %vm1628_vm5, %v1625_v40  ;;  %v1601_v54 = vadd.f32 %v3158_v34, %v1569_v6  ;;  %v1255_v35 = vmax.f32 %v3350_v33, %v1227_v24  ;;  %v2287_v44 = vpop.f32.mrb[99].mxu0  ;;  %v2382_v46 = vpop.f32.mrb[99].mxu1 }
 0x1bd   : > { %v1626_v47 = vmax.f32 %v1601_v54, 0.0  ;;  %v1570_v13 = vmax.f32 %v1255_v35, %v1542_v2 }
 0x1bf   : > { %1652 = vst.msk [vmem:[%s3168_s14 + $0xb8] sm:$0xff] %vm1628_vm5, %v1626_v47  ;;  %v1602_v15 = vadd.f32 %v3158_v34, %v1570_v13 }
 0x1c1   : > { %v1627_v26 = vmax.f32 %v1602_v15, 0.0 }
 0x1c3   : > { %1653 = vst.msk [vmem:[%s3168_s14 + $0xc0] sm:$0xff] %vm1628_vm5, %v1627_v26 }
 0x1c4 PF: > { %s16_s21 = sadd.s32 1, %s2465_s21  }
 0x1c5   : > { %p13_p4 = scmp.ge.s32.totalorder %s16_s21, 4  }
 0x1c7   :  { %15 = sbr.rel (!%p13_p4) target bundleno = 1 (0x1), region = 83 }

// kernel: cnn_forward.4
= control target key start
LH: loop header
LB: loop body
LE: loop exit
PB: predicated region body
PF: predicated region fallthrough
CT: control target
= control target key end

     0   :  { %s1144_s21 = smov 0   ;;  %s1448_s0 = inlined_call_operand.vmem [shape: f32[64,200], index: 0, kind: input, shape index: {}]   ;;  %s1449_s1 = inlined_call_operand.vmem [shape: f32[64,200], index: 1, kind: input, shape index: {}]   ;;  %s1450_s2 = inlined_call_operand.vmem [shape: f32[64,200], index: 2, kind: input, shape index: {}]   ;;  %s1451_s3 = inlined_call_operand.vmem [shape: f32[64,200], index: 3, kind: input, shape index: {}]   ;;  %s1452_s4 = inlined_call_operand.vmem [shape: f32[200,16], index: 4, kind: input, shape index: {}]   ;;  %s1453_s5 = inlined_call_operand.vmem [shape: f32[1,16], index: 5, kind: input, shape index: {}]   ;;  %s1454_s6 = inlined_call_operand.vmem [shape: f32[64,16], index: 6, kind: output, shape index: {}]  }
   0x1 LB: > { %s903_s22 = sadd.s32 4294967295, %s1105_s21   ;;  %p907_p0 = scmp.ge.s32.totalorder %s1105_s21, 1  ;;  %s1105_s21 = sphi %s1144_s21, %s16_s21  }
   0x2   : > { %p250_p1 = scmp.lt.s32.totalorder %s1105_s21, 3 }
   0x4   : > { %p251_p2 = pnand %p907_p0, %p250_p1 }
   0x5   : > { %v333_v0 = vld [vmem:[%s1452_s4] sm:$0xff] (!%p251_p2)  ;;  %v334_v1 = vld [vmem:[%s1452_s4 + $0x8] sm:$0xff] (!%p251_p2)  ;;  %v335_v2 = vld [vmem:[%s1452_s4 + $0x10] sm:$0xff] (!%p251_p2)  ;;  %s908_s29 = sshll.u32 (!%p251_p2), %s903_s22, 2  ;;  %v1107_v3 = vmov (!%p251_p2), 0.0|0.0   ;;  %vm366_vm0 = vcmask (!%p251_p2), 588800  }
   0x6   : > { %254 = sbr.rel (%p251_p2) target bundleno = 340 (0x154), region = 44  ;;  %945 = vmatprep.subr.bf16.mxu0 (!%p251_p2), %v1107_v3  ;;  %v1162_v4 = vpack.c.bf16 (!%p251_p2), %v334_v1, %v333_v0  ;;  %981 = vmatprep.subr.bf16.mxu1 (!%p251_p2), %v1107_v3  ;;  %v336_v5 = vld [vmem:[%s1452_s4 + $0x18] sm:$0xff] (!%p251_p2)  ;;  %p300_p3 = scmp.lt.s32.totalorder (!%p251_p2), %s908_s29, 7  ;;  %v337_v7 = vld [vmem:[%s1452_s4 + $0x20] sm:$0xff] (!%p251_p2)  ;;  %v338_v8 = vld [vmem:[%s1452_s4 + $0x28] sm:$0xff] (!%p251_p2)  ;;  %v1108_v39 = vmov (!%p251_p2), 0.0  }
   0x7   : > { %v1170_v6 = vpack.c.bf16 (!%p251_p2), %v336_v5, %v335_v2  ;;  %v1199_v9 = vpack.c.bf16 (!%p251_p2), %v338_v8, %v337_v7  ;;  %v339_v10 = vld [vmem:[%s1452_s4 + $0x30] sm:$0xff] (!%p251_p2)  ;;  %v340_v11 = vld [vmem:[%s1452_s4 + $0x38] sm:$0xff] (!%p251_p2)  ;;  %v341_v15 = vld [vmem:[%s1452_s4 + $0x40] sm:$0xff] (!%p251_p2)  ;;  %vm806_vm1 = vcmask (!%p251_p2), 130048  }
   0x8   : > { %947 = vmatpush1.bf16.msra.mxu0 (!%p251_p2), %v1162_v4  ;;  %983 = vmatpush1.bf16.msra.mxu1 (!%p251_p2), %v1162_v4  ;;  %v1215_v14 = vpack.c.bf16 (!%p251_p2), %v340_v11, %v339_v10  ;;  %v342_v16 = vld [vmem:[%s1452_s4 + $0x48] sm:$0xff] (!%p251_p2)  ;;  %v343_v18 = vld [vmem:[%s1452_s4 + $0x50] sm:$0xff] (!%p251_p2)  ;;  %v344_v19 = vld [vmem:[%s1452_s4 + $0x58] sm:$0xff] (!%p251_p2) }
   0x9   : > { %948 = vmatprep.subr.bf16.mxu0 (!%p251_p2), %v1107_v3  ;;  %984 = vmatprep.subr.bf16.mxu1 (!%p251_p2), %v1107_v3  ;;  %v1227_v17 = vpack.c.bf16 (!%p251_p2), %v342_v16, %v341_v15  ;;  %v1239_v20 = vpack.c.bf16 (!%p251_p2), %v344_v19, %v343_v18  ;;  %v345_v21 = vld [vmem:[%s1452_s4 + $0x60] sm:$0xff] (!%p251_p2)  ;;  %v346_v22 = vld [vmem:[%s1452_s4 + $0x68] sm:$0xff] (!%p251_p2)  ;;  %v347_v24 = vld [vmem:[%s1452_s4 + $0x70] sm:$0xff] (!%p251_p2) }
   0xa   : > { %v1251_v23 = vpack.c.bf16 (!%p251_p2), %v346_v22, %v345_v21  ;;  %v348_v25 = vld [vmem:[%s1452_s4 + $0x78] sm:$0xff] (!%p251_p2)  ;;  %v349_v27 = vld [vmem:[%s1452_s4 + $0x80] sm:$0xff] (!%p251_p2)  ;;  %v350_v28 = vld [vmem:[%s1452_s4 + $0x88] sm:$0xff] (!%p251_p2) }
   0xb   : > { %v1263_v26 = vpack.c.bf16 (!%p251_p2), %v348_v25, %v347_v24  ;;  %v1275_v29 = vpack.c.bf16 (!%p251_p2), %v350_v28, %v349_v27  ;;  %v351_v30 = vld [vmem:[%s1452_s4 + $0x90] sm:$0xff] (!%p251_p2)  ;;  %v352_v31 = vld [vmem:[%s1452_s4 + $0x98] sm:$0xff] (!%p251_p2)  ;;  %v353_v33 = vld [vmem:[%s1452_s4 + $0xa0] sm:$0xff] (!%p251_p2) }
   0xc   : > { %950 = vmatpush1.bf16.msra.mxu0 (!%p251_p2), %v1170_v6  ;;  %986 = vmatpush1.bf16.msra.mxu1 (!%p251_p2), %v1170_v6  ;;  %v1287_v32 = vpack.c.bf16 (!%p251_p2), %v352_v31, %v351_v30  ;;  %v354_v34 = vld [vmem:[%s1452_s4 + $0xa8] sm:$0xff] (!%p251_p2)  ;;  %v355_v36 = vld [vmem:[%s1452_s4 + $0xb0] sm:$0xff] (!%p251_p2)  ;;  %v356_v37 = vld [vmem:[%s1452_s4 + $0xb8] sm:$0xff] (!%p251_p2) }
   0xd   : > { %s1456_s29 = smov (!%p300_p3, %s908_s29), 7  ;;  %951 = vmatprep.subr.bf16.mxu0 %v1107_v3  ;;  %987 = vmatprep.subr.bf16.mxu1 %v1107_v3  ;;  %v1299_v35 = vpack.c.bf16 %v354_v34, %v353_v33  ;;  %v1311_v38 = vpack.c.bf16 %v356_v37, %v355_v36  ;;  %v1321_v40 = vld [vmem:[%s1452_s4 + $0xc0] sm:$0xff] }
   0xe   : > { %s1183_s12 = sshll.u32 %s1456_s29, 4  ;;  %v938_v31 = vld [vmem:[%s1453_s5] ss:$0 sm:$0xff] }
   0xf   : > { %s1189_s15 = scalar_lea.vmem %s1448_s0, %s1183_s12  ;;  %s1195_s18 = scalar_lea.vmem %s1449_s1, %s1183_s12 }
  0x10   : > { %v359_v12 = vld [vmem:[%s1189_s15 + $0x8] sm:$0xff]  ;;  %953 = vmatpush1.bf16.msra.mxu0 %v1199_v9  ;;  %989 = vmatpush1.bf16.msra.mxu1 %v1199_v9  ;;  %v358_v41 = vld [vmem:[%s1189_s15] sm:$0xff]  ;;  %v361_v43 = vld [vmem:[%s1189_s15 + $0x18] sm:$0xff]  ;;  %s1357_s22 = scalar_lea.vmem %s1450_s2, %s1183_s12  ;;  %s1365_s25 = scalar_lea.vmem %s1451_s3, %s1183_s12 }
  0x11   : > { %922 = vmatprep.mubr.msk.f32.mxu0 %vm366_vm0, %v359_v12  ;;  %v465_v13 = vld [vmem:[%s1195_s18 + $0x8] sm:$0xff]  ;;  %954 = vmatprep.subr.bf16.mxu0 %v1107_v3  ;;  %v464_v42 = vld [vmem:[%s1195_s18] sm:$0xff]  ;;  %v360_v44 = vld [vmem:[%s1189_s15 + $0x10] sm:$0xff] }
  0x12   : > { %926 = vmatprep.mubr.msk.f32.mxu1 %vm366_vm0, %v465_v13  ;;  %990 = vmatprep.subr.bf16.mxu1 %v1107_v3  ;;  %v467_v45 = vld [vmem:[%s1195_s18 + $0x18] sm:$0xff]  ;;  %v466_v46 = vld [vmem:[%s1195_s18 + $0x10] sm:$0xff]  ;;  %v363_v47 = vld [vmem:[%s1189_s15 + $0x28] sm:$0xff] }
  0x13   : > { %v362_v48 = vld [vmem:[%s1189_s15 + $0x20] sm:$0xff]  ;;  %v469_v49 = vld [vmem:[%s1195_s18 + $0x28] sm:$0xff]  ;;  %v365_v51 = vld [vmem:[%s1189_s15 + $0x38] sm:$0xff] }
  0x14   : > { %956 = vmatpush1.bf16.msra.mxu0 %v1215_v14  ;;  %992 = vmatpush1.bf16.msra.mxu1 %v1215_v14  ;;  %v468_v50 = vld [vmem:[%s1195_s18 + $0x20] sm:$0xff]  ;;  %v364_v52 = vld [vmem:[%s1189_s15 + $0x30] sm:$0xff]  ;;  %v471_v53 = vld [vmem:[%s1195_s18 + $0x38] sm:$0xff] }
  0x15   : > { %957 = vmatprep.subr.bf16.mxu0 %v1107_v3  ;;  %993 = vmatprep.subr.bf16.mxu1 %v1107_v3  ;;  %v470_v54 = vld [vmem:[%s1195_s18 + $0x30] sm:$0xff]  ;;  %v574_v55 = vld [vmem:[%s1357_s22 + $0x8] sm:$0xff]  ;;  %v573_v57 = vld [vmem:[%s1357_s22] sm:$0xff]  ;;  %s921_s18 = sshll.u32 %s1456_s29, 3 }
  0x16   : > { %v683_v56 = vld [vmem:[%s1365_s25 + $0x8] sm:$0xff]  ;;  %v576_v58 = vld [vmem:[%s1357_s22 + $0x18] sm:$0xff]  ;;  %v682_v59 = vld [vmem:[%s1365_s25] sm:$0xff]  ;;  %s331_s28 = scalar_lea.vmem %s1454_s6, %s921_s18 }
  0x17   : > { %v685_v60 = vld [vmem:[%s1365_s25 + $0x18] sm:$0xff]  ;;  %v575_v61 = vld [vmem:[%s1357_s22 + $0x10] sm:$0xff]  ;;  %v578_v62 = vld [vmem:[%s1357_s22 + $0x28] sm:$0xff] }
  0x18   : > { %959 = vmatpush1.bf16.msra.mxu0 %v1227_v17  ;;  %995 = vmatpush1.bf16.msra.mxu1 %v1227_v17  ;;  %v684_v63 = vld [vmem:[%s1365_s25 + $0x10] sm:$0xff]  ;;  %v687_v0 = vld [vmem:[%s1365_s25 + $0x28] sm:$0xff]  ;;  %v577_v1 = vld [vmem:[%s1357_s22 + $0x20] sm:$0xff] }
  0x19   : > { %960 = vmatprep.subr.bf16.mxu0 %v1107_v3  ;;  %996 = vmatprep.subr.bf16.mxu1 %v1107_v3  ;;  %v580_v2 = vld [vmem:[%s1357_s22 + $0x38] sm:$0xff]  ;;  %v579_v5 = vld [vmem:[%s1357_s22 + $0x30] sm:$0xff] }
  0x1c   : > { %962 = vmatpush1.bf16.msra.mxu0 %v1239_v20  ;;  %998 = vmatpush1.bf16.msra.mxu1 %v1239_v20 }
  0x1d   : > { %963 = vmatprep.subr.bf16.mxu0 %v1107_v3  ;;  %999 = vmatprep.subr.bf16.mxu1 %v1107_v3 }
  0x20   : > { %965 = vmatpush1.bf16.msra.mxu0 %v1251_v23  ;;  %1001 = vmatpush1.bf16.msra.mxu1 %v1251_v23 }
  0x21   : > { %966 = vmatprep.subr.bf16.mxu0 %v1107_v3  ;;  %1002 = vmatprep.subr.bf16.mxu1 %v1107_v3 }
  0x24   : > { %968 = vmatpush1.bf16.msra.mxu0 %v1263_v26  ;;  %1004 = vmatpush1.bf16.msra.mxu1 %v1263_v26 }
  0x25   : > { %969 = vmatprep.subr.bf16.mxu0 %v1107_v3  ;;  %1005 = vmatprep.subr.bf16.mxu1 %v1107_v3 }
  0x28   : > { %971 = vmatpush1.bf16.msra.mxu0 %v1275_v29  ;;  %1007 = vmatpush1.bf16.msra.mxu1 %v1275_v29 }
  0x29   : > { %972 = vmatprep.subr.bf16.mxu0 %v1107_v3  ;;  %1008 = vmatprep.subr.bf16.mxu1 %v1107_v3 }
  0x2c   : > { %974 = vmatpush1.bf16.msra.mxu0 %v1287_v32  ;;  %1010 = vmatpush1.bf16.msra.mxu1 %v1287_v32 }
  0x2d   : > { %975 = vmatprep.subr.bf16.mxu0 %v1107_v3  ;;  %1011 = vmatprep.subr.bf16.mxu1 %v1107_v3 }
  0x30   : > { %977 = vmatpush1.bf16.msra.mxu0 %v1299_v35  ;;  %1013 = vmatpush1.bf16.msra.mxu1 %v1299_v35 }
  0x31   : > { %978 = vmatprep.subr.bf16.mxu0 %v1107_v3  ;;  %1014 = vmatprep.subr.bf16.mxu1 %v1107_v3 }
  0x34   : > { %980 = vmatpush1.bf16.msra.mxu0 %v1311_v38  ;;  %1016 = vmatpush1.bf16.msra.mxu1 %v1311_v38 }
  0x35   : > { %427 = vmatprep.subr.mxu0 %v1108_v39  ;;  %532 = vmatprep.subr.mxu1 %v1108_v39 }
  0x38   : > { %428 = vmatpush1.msra.mxu0 %v1321_v40  ;;  %533 = vmatpush1.msra.mxu1 %v1321_v40 }
  0x39   : > { %444 = vmatmul.mubr.f32.vlgmr.msra.gmra.mrb[0].mxu0 %v358_v41  ;;  %1017 = vmatprep.subr.bf16.mxu0 %v1107_v3 }
  0x3a   : > { %549 = vmatmul.mubr.f32.vlgmr.msra.gmra.mrb[0].mxu1 %v464_v42  ;;  %1019 = vmatpush1.bf16.msra.mxu0 %v1162_v4 }
  0x3b   : > { %1053 = vmatprep.subr.bf16.mxu1 %v1107_v3  ;;  %1020 = vmatprep.subr.bf16.mxu0 %v1107_v3 }
  0x3c   : > { %1055 = vmatpush1.bf16.msra.mxu1 %v1162_v4  ;;  %923 = vmatprep.mubr.msk.f32.mxu0 %vm366_vm0, %v361_v43  ;;  %v689_v4 = vld [vmem:[%s1365_s25 + $0x38] sm:$0xff] }
  0x3d   : > { %1056 = vmatprep.subr.bf16.mxu1 %v1107_v3  ;;  %449 = vmatmul.mubr.f32.gmra.mrb[2].mxu0 %v360_v44 }
  0x3e   : > { %1022 = vmatpush1.bf16.msra.mxu0 %v1170_v6  ;;  %927 = vmatprep.mubr.msk.f32.mxu1 %vm366_vm0, %v467_v45 }
  0x3f   : > { %1023 = vmatprep.subr.bf16.mxu0 %v1107_v3  ;;  %554 = vmatmul.mubr.f32.gmra.mrb[2].mxu1 %v466_v46 }
  0x40   : > { %1058 = vmatpush1.bf16.msra.mxu1 %v1170_v6  ;;  %924 = vmatprep.mubr.msk.f32.mxu0 %vm366_vm0, %v363_v47  ;;  %v688_v6 = vld [vmem:[%s1365_s25 + $0x30] sm:$0xff] }
  0x41   : > { %1059 = vmatprep.subr.bf16.mxu1 %v1107_v3  ;;  %454 = vmatmul.mubr.f32.gmra.mrb[4].mxu0 %v362_v48 }
  0x42   : > { %1025 = vmatpush1.bf16.msra.mxu0 %v1199_v9  ;;  %928 = vmatprep.mubr.msk.f32.mxu1 %vm366_vm0, %v469_v49 }
  0x43   : > { %1026 = vmatprep.subr.bf16.mxu0 %v1107_v3  ;;  %559 = vmatmul.mubr.f32.gmra.mrb[4].mxu1 %v468_v50 }
  0x44   : > { %1061 = vmatpush1.bf16.msra.mxu1 %v1199_v9  ;;  %925 = vmatprep.mubr.msk.f32.mxu0 %vm366_vm0, %v365_v51 }
  0x45   : > { %1062 = vmatprep.subr.bf16.mxu1 %v1107_v3  ;;  %459 = vmatmul.mubr.f32.gmra.mrb[6].mxu0 %v364_v52 }
  0x46   : > { %1028 = vmatpush1.bf16.msra.mxu0 %v1215_v14  ;;  %929 = vmatprep.mubr.msk.f32.mxu1 %vm366_vm0, %v471_v53 }
  0x47   : > { %1029 = vmatprep.subr.bf16.mxu0 %v1107_v3  ;;  %564 = vmatmul.mubr.f32.gmra.mrb[6].mxu1 %v470_v54 }
  0x48   : > { %1064 = vmatpush1.bf16.msra.mxu1 %v1215_v14  ;;  %930 = vmatprep.mubr.msk.f32.mxu0 %vm366_vm0, %v574_v55 }
  0x49   : > { %1065 = vmatprep.subr.bf16.mxu1 %v1107_v3  ;;  %934 = vmatprep.mubr.msk.f32.mxu1 %vm366_vm0, %v683_v56 }
  0x4a   : > { %1031 = vmatpush1.bf16.msra.mxu0 %v1227_v17 }
  0x4b   : > { %1032 = vmatprep.subr.bf16.mxu0 %v1107_v3 }
  0x4c   : > { %1067 = vmatpush1.bf16.msra.mxu1 %v1227_v17 }
  0x4d   : > { %1068 = vmatprep.subr.bf16.mxu1 %v1107_v3 }
  0x4e   : > { %1034 = vmatpush1.bf16.msra.mxu0 %v1239_v20 }
  0x4f   : > { %1035 = vmatprep.subr.bf16.mxu0 %v1107_v3 }
  0x50   : > { %1070 = vmatpush1.bf16.msra.mxu1 %v1239_v20 }
  0x51   : > { %1071 = vmatprep.subr.bf16.mxu1 %v1107_v3 }
  0x52   : > { %1037 = vmatpush1.bf16.msra.mxu0 %v1251_v23 }
  0x53   : > { %1038 = vmatprep.subr.bf16.mxu0 %v1107_v3 }
  0x54   : > { %1073 = vmatpush1.bf16.msra.mxu1 %v1251_v23 }
  0x55   : > { %1074 = vmatprep.subr.bf16.mxu1 %v1107_v3 }
  0x56   : > { %1040 = vmatpush1.bf16.msra.mxu0 %v1263_v26 }
  0x57   : > { %1041 = vmatprep.subr.bf16.mxu0 %v1107_v3 }
  0x58   : > { %1076 = vmatpush1.bf16.msra.mxu1 %v1263_v26 }
  0x59   : > { %1077 = vmatprep.subr.bf16.mxu1 %v1107_v3 }
  0x5a   : > { %1043 = vmatpush1.bf16.msra.mxu0 %v1275_v29 }
  0x5b   : > { %1044 = vmatprep.subr.bf16.mxu0 %v1107_v3 }
  0x5c   : > { %1079 = vmatpush1.bf16.msra.mxu1 %v1275_v29 }
  0x5d   : > { %1080 = vmatprep.subr.bf16.mxu1 %v1107_v3 }
  0x5e   : > { %1046 = vmatpush1.bf16.msra.mxu0 %v1287_v32 }
  0x5f   : > { %1047 = vmatprep.subr.bf16.mxu0 %v1107_v3 }
  0x60   : > { %1082 = vmatpush1.bf16.msra.mxu1 %v1287_v32 }
  0x61   : > { %1083 = vmatprep.subr.bf16.mxu1 %v1107_v3 }
  0x62   : > { %1049 = vmatpush1.bf16.msra.mxu0 %v1299_v35 }
  0x63   : > { %1050 = vmatprep.subr.bf16.mxu0 %v1107_v3 }
  0x64   : > { %1085 = vmatpush1.bf16.msra.mxu1 %v1299_v35 }
  0x65   : > { %1086 = vmatprep.subr.bf16.mxu1 %v1107_v3  ;;  %v686_v3 = vld [vmem:[%s1365_s25 + $0x20] sm:$0xff] }
  0x66   : > { %1052 = vmatpush1.bf16.msra.mxu0 %v1311_v38 }
  0x67   : > { %641 = vmatprep.subr.mxu0 %v1108_v39 }
  0x68   : > { %1088 = vmatpush1.bf16.msra.mxu1 %v1311_v38 }
  0x69   : > { %750 = vmatprep.subr.mxu1 %v1108_v39 }
  0x6a   : > { %642 = vmatpush1.msra.mxu0 %v1321_v40 }
  0x6b   : > { %658 = vmatmul.mubr.f32.vlgmr.msra.gmra.mrb[8].mxu0 %v573_v57 }
  0x6c   : > { %751 = vmatpush1.msra.mxu1 %v1321_v40  ;;  %931 = vmatprep.mubr.msk.f32.mxu0 %vm366_vm0, %v576_v58 }
  0x6d   : > { %767 = vmatmul.mubr.f32.vlgmr.msra.gmra.mrb[8].mxu1 %v682_v59 }
  0x6e   : > { %935 = vmatprep.mubr.msk.f32.mxu1 %vm366_vm0, %v685_v60 }
  0x6f   : > { %663 = vmatmul.mubr.f32.gmra.mrb[10].mxu0 %v575_v61 }
  0x70   : > { %932 = vmatprep.mubr.msk.f32.mxu0 %vm366_vm0, %v578_v62 }
  0x71   : > { %772 = vmatmul.mubr.f32.gmra.mrb[10].mxu1 %v684_v63 }
  0x72   : > { %936 = vmatprep.mubr.msk.f32.mxu1 %vm366_vm0, %v687_v0 }
  0x73   : > { %668 = vmatmul.mubr.f32.gmra.mrb[12].mxu0 %v577_v1 }
  0x74   : > { %933 = vmatprep.mubr.msk.f32.mxu0 %vm366_vm0, %v580_v2 }
  0x75   : > { %777 = vmatmul.mubr.f32.gmra.mrb[12].mxu1 %v686_v3 }
  0x76   : > { %937 = vmatprep.mubr.msk.f32.mxu1 %vm366_vm0, %v689_v4 }
  0x77   : > { %673 = vmatmul.mubr.f32.gmra.mrb[14].mxu0 %v579_v5 }
  0x79   : > { %782 = vmatmul.mubr.f32.gmra.mrb[14].mxu1 %v688_v6 }
 0x10c   : > { %v445_v7 = vpop.f32.mrb[0].mxu0 }
 0x10d   : > { %v447_v8 = vpop.f32.mrb[1].mxu0  ;;  %v550_v9 = vpop.f32.mrb[0].mxu1 }
 0x10e   : > { %v569_v10 = vmax.f32 %v445_v7, %v550_v9  ;;  %v552_v11 = vpop.f32.mrb[1].mxu1 }
 0x110   : > { %v450_v12 = vpop.f32.mrb[2].mxu0 }
 0x111   : > { %v452_v13 = vpop.f32.mrb[3].mxu0 }
 0x112   : > { %v555_v14 = vpop.f32.mrb[2].mxu1 }
 0x113   : > { %v570_v15 = vmax.f32 %v450_v12, %v555_v14  ;;  %v557_v16 = vpop.f32.mrb[3].mxu1 }
 0x114   : > { %v455_v17 = vpop.f32.mrb[4].mxu0 }
 0x115   : > { %v457_v18 = vpop.f32.mrb[5].mxu0 }
 0x116   : > { %v560_v19 = vpop.f32.mrb[4].mxu1 }
 0x117   : > { %v571_v20 = vmax.f32 %v455_v17, %v560_v19  ;;  %v562_v21 = vpop.f32.mrb[5].mxu1 }
 0x118   : > { %v460_v22 = vpop.f32.mrb[6].mxu0 }
 0x119   : > { %v462_v23 = vpop.f32.mrb[7].mxu0 }
 0x11a   : > { %v565_v24 = vpop.f32.mrb[6].mxu1 }
 0x11b   : > { %v572_v25 = vmax.f32 %v460_v22, %v565_v24  ;;  %v567_v26 = vpop.f32.mrb[7].mxu1 }
 0x13e   : > { %v659_v27 = vpop.f32.mrb[8].mxu0 }
 0x13f   : > { %v678_v28 = vmax.f32 %v569_v10, %v659_v27  ;;  %v661_v29 = vpop.f32.mrb[9].mxu0 }
 0x140   : > { %v768_v30 = vpop.f32.mrb[8].mxu1 }
 0x141   : > { %v787_v32 = vmax.f32 %v678_v28, %v768_v30  ;;  %v770_v33 = vpop.f32.mrb[9].mxu1 }
 0x142   : > { %v664_v34 = vpop.f32.mrb[10].mxu0 }
 0x143   : > { %v798_v35 = vadd.f32 %v938_v31, %v787_v32  ;;  %v679_v36 = vmax.f32 %v570_v15, %v664_v34  ;;  %v666_v37 = vpop.f32.mrb[11].mxu0 }
 0x144   : > { %v773_v38 = vpop.f32.mrb[10].mxu1 }
 0x145   : > { %v802_v39 = vmax.f32 %v798_v35, 0.0  ;;  %v788_v40 = vmax.f32 %v679_v36, %v773_v38  ;;  %v775_v41 = vpop.f32.mrb[11].mxu1 }
 0x146   : > { %v669_v42 = vpop.f32.mrb[12].mxu0 }
 0x147   : > { %807 = vst.msk [vmem:[%s331_s28] sm:$0xff] %vm806_vm1, %v802_v39  ;;  %v799_v43 = vadd.f32 %v938_v31, %v788_v40  ;;  %v680_v44 = vmax.f32 %v571_v20, %v669_v42  ;;  %v671_v45 = vpop.f32.mrb[13].mxu0 }
 0x148   : > { %v778_v46 = vpop.f32.mrb[12].mxu1 }
 0x149   : > { %v803_v47 = vmax.f32 %v799_v43, 0.0  ;;  %v789_v48 = vmax.f32 %v680_v44, %v778_v46  ;;  %v780_v49 = vpop.f32.mrb[13].mxu1 }
 0x14a   : > { %v674_v50 = vpop.f32.mrb[14].mxu0 }
 0x14b   : > { %808 = vst.msk [vmem:[%s331_s28 + $0x8] sm:$0xff] %vm806_vm1, %v803_v47  ;;  %v800_v51 = vadd.f32 %v938_v31, %v789_v48  ;;  %v681_v52 = vmax.f32 %v572_v25, %v674_v50  ;;  %v676_v53 = vpop.f32.mrb[15].mxu0 }
 0x14c   : > { %v783_v54 = vpop.f32.mrb[14].mxu1 }
 0x14d   : > { %v804_v55 = vmax.f32 %v800_v51, 0.0  ;;  %v790_v56 = vmax.f32 %v681_v52, %v783_v54  ;;  %v785_v57 = vpop.f32.mrb[15].mxu1 }
 0x14f   : > { %809 = vst.msk [vmem:[%s331_s28 + $0x10] sm:$0xff] %vm806_vm1, %v804_v55  ;;  %v801_v58 = vadd.f32 %v938_v31, %v790_v56 }
 0x151   : > { %v805_v59 = vmax.f32 %v801_v58, 0.0 }
 0x153   : > { %810 = vst.msk [vmem:[%s331_s28 + $0x18] sm:$0xff] %vm806_vm1, %v805_v59 }
 0x154 PF: > { %s16_s21 = sadd.s32 1, %s1105_s21  }
 0x155   : > { %p13_p4 = scmp.ge.s32.totalorder %s16_s21, 4  }
 0x157   :  { %15 = sbr.rel (!%p13_p4) target bundleno = 1 (0x1), region = 83 }

// kernel: cnn_forward.5
= control target key start
LH: loop header
LB: loop body
LE: loop exit
PB: predicated region body
PF: predicated region fallthrough
CT: control target
= control target key end

     0   :  { %v677_v2 = vmov 0.0|0.0   ;;  %vm87_vm0 = vcmask 130048   ;;  %vm678_vm1 = vmmov 0   ;;  %s1016_s1 = inlined_call_operand.vmem [shape: f32[400,128], index: 1, kind: input, shape index: {}]   ;;  %s1017_s0 = inlined_call_operand.vmem [shape: f32[8,400], index: 0, kind: input, shape index: {}]   ;;  %s1018_s3 = inlined_call_operand.vmem [shape: f32[128,128], index: 3, kind: input, shape index: {}]   ;;  %s1019_s5 = inlined_call_operand.vmem [shape: f32[128,128], index: 5, kind: input, shape index: {}]   ;;  %s1020_s2 = inlined_call_operand.vmem [shape: f32[1,128], index: 2, kind: input, shape index: {}]   ;;  %s1021_s4 = inlined_call_operand.vmem [shape: f32[1,128], index: 4, kind: input, shape index: {}]   ;;  %s1022_s6 = inlined_call_operand.vmem [shape: f32[1,128], index: 6, kind: input, shape index: {}]   ;;  %s1023_s7 = inlined_call_operand.vmem [shape: f32[8,128], index: 7, kind: output, shape index: {}]  }
   0x1   :  { %v46_v0 = vld [vmem:[%s1016_s1 + $0x80] sm:$0xff]  ;;  %v47_v1 = vld [vmem:[%s1016_s1 + $0x88] sm:$0xff]  ;;  %599 = vmatprep.subr.bf16.mxu1 %v677_v2  ;;  %v48_v10 = vld [vmem:[%s1016_s1 + $0x90] sm:$0xff] }
   0x2   :  { %v30_v3 = vld [vmem:[%s1016_s1] sm:$0xff]  ;;  %v567_v4 = vpack.c.bf16 %v47_v1, %v46_v0  ;;  %v31_v5 = vld [vmem:[%s1016_s1 + $0x8] sm:$0xff]  ;;  %v49_v11 = vld [vmem:[%s1016_s1 + $0x98] sm:$0xff] }
   0x3   :  { %v62_v6 = vld [vmem:[%s1016_s1 + $0x100] sm:$0xff]  ;;  %v63_v7 = vld [vmem:[%s1016_s1 + $0x108] sm:$0xff]  ;;  %v569_v8 = vpack.c.bf16 %v31_v5, %v30_v3  ;;  %v32_v12 = vld [vmem:[%s1016_s1 + $0x10] sm:$0xff]  ;;  %v571_v13 = vpack.c.bf16 %v49_v11, %v48_v10 }
   0x4   :  { %v600_v9 = vpack.c.bf16 %v63_v7, %v62_v6  ;;  %568 = vmatprep.subr.bf16.mxu0 %v567_v4  ;;  %v33_v14 = vld [vmem:[%s1016_s1 + $0x18] sm:$0xff]  ;;  %v64_v15 = vld [vmem:[%s1016_s1 + $0x110] sm:$0xff]  ;;  %v50_v19 = vld [vmem:[%s1016_s1 + $0xa0] sm:$0xff] }
   0x5   :  { %v65_v16 = vld [vmem:[%s1016_s1 + $0x118] sm:$0xff]  ;;  %570 = vmatpush3.bf16.msra.mxu0 %v569_v8  ;;  %v573_v17 = vpack.c.bf16 %v33_v14, %v32_v12  ;;  %v51_v20 = vld [vmem:[%s1016_s1 + $0xa8] sm:$0xff]  ;;  %v34_v21 = vld [vmem:[%s1016_s1 + $0x20] sm:$0xff] }
   0x6   :  { %601 = vmatpush1.bf16.msra.mxu1 %v600_v9  ;;  %v603_v18 = vpack.c.bf16 %v65_v16, %v64_v15  ;;  %572 = vmatprep.subr.bf16.mxu0 %v571_v13  ;;  %v575_v22 = vpack.c.bf16 %v51_v20, %v50_v19  ;;  %v35_v23 = vld [vmem:[%s1016_s1 + $0x28] sm:$0xff]  ;;  %v66_v24 = vld [vmem:[%s1016_s1 + $0x120] sm:$0xff]  ;;  %v52_v26 = vld [vmem:[%s1016_s1 + $0xb0] sm:$0xff] }
   0x7   :  { %602 = vmatprep.subr.bf16.mxu1 %v677_v2  ;;  %v67_v25 = vld [vmem:[%s1016_s1 + $0x128] sm:$0xff]  ;;  %v53_v27 = vld [vmem:[%s1016_s1 + $0xb8] sm:$0xff]  ;;  %v577_v28 = vpack.c.bf16 %v35_v23, %v34_v21  ;;  %v36_v30 = vld [vmem:[%s1016_s1 + $0x30] sm:$0xff] }
   0x8   :  { %v606_v29 = vpack.c.bf16 %v67_v25, %v66_v24  ;;  %v579_v31 = vpack.c.bf16 %v53_v27, %v52_v26  ;;  %v37_v32 = vld [vmem:[%s1016_s1 + $0x38] sm:$0xff]  ;;  %v68_v33 = vld [vmem:[%s1016_s1 + $0x130] sm:$0xff]  ;;  %v54_v35 = vld [vmem:[%s1016_s1 + $0xc0] sm:$0xff] }
   0x9   :  { %574 = vmatpush3.bf16.msra.mxu0 %v573_v17  ;;  %v69_v34 = vld [vmem:[%s1016_s1 + $0x138] sm:$0xff]  ;;  %v55_v36 = vld [vmem:[%s1016_s1 + $0xc8] sm:$0xff]  ;;  %v581_v37 = vpack.c.bf16 %v37_v32, %v36_v30  ;;  %v38_v39 = vld [vmem:[%s1016_s1 + $0x40] sm:$0xff] }
   0xa   :  { %604 = vmatpush1.bf16.msra.mxu1 %v603_v18  ;;  %576 = vmatprep.subr.bf16.mxu0 %v575_v22  ;;  %v609_v38 = vpack.c.bf16 %v69_v34, %v68_v33  ;;  %v583_v40 = vpack.c.bf16 %v55_v36, %v54_v35  ;;  %v39_v41 = vld [vmem:[%s1016_s1 + $0x48] sm:$0xff]  ;;  %v70_v42 = vld [vmem:[%s1016_s1 + $0x140] sm:$0xff]  ;;  %v56_v44 = vld [vmem:[%s1016_s1 + $0xd0] sm:$0xff] }
   0xb   :  { %605 = vmatprep.subr.bf16.mxu1 %v677_v2  ;;  %v71_v43 = vld [vmem:[%s1016_s1 + $0x148] sm:$0xff]  ;;  %v57_v45 = vld [vmem:[%s1016_s1 + $0xd8] sm:$0xff]  ;;  %v585_v46 = vpack.c.bf16 %v39_v41, %v38_v39  ;;  %v40_v48 = vld [vmem:[%s1016_s1 + $0x50] sm:$0xff]  ;;  %v679_v41 = vmov 0.0  }
   0xc   :  { %v612_v47 = vpack.c.bf16 %v71_v43, %v70_v42  ;;  %v41_v49 = vld [vmem:[%s1016_s1 + $0x58] sm:$0xff]  ;;  %v27_v50 = vld [vmem:[%s1017_s0 + $0x8] sm:$0xff]  ;;  %v587_v51 = vpack.c.bf16 %v57_v45, %v56_v44  ;;  %v72_v52 = vld [vmem:[%s1016_s1 + $0x150] sm:$0xff] }
   0xd   :  { %578 = vmatpush3.bf16.msra.mxu0 %v577_v28  ;;  %v73_v53 = vld [vmem:[%s1016_s1 + $0x158] sm:$0xff]  ;;  %v58_v55 = vld [vmem:[%s1016_s1 + $0xe0] sm:$0xff]  ;;  %v59_v56 = vld [vmem:[%s1016_s1 + $0xe8] sm:$0xff]  ;;  %155 = vmatprep.mubr.f32.mxu0 %v27_v50  ;;  %v589_v57 = vpack.c.bf16 %v41_v49, %v40_v48 }
   0xe   :  { %607 = vmatpush1.bf16.msra.mxu1 %v606_v29  ;;  %580 = vmatprep.subr.bf16.mxu0 %v579_v31  ;;  %v29_v54 = vld [vmem:[%s1017_s0 + $0x18] sm:$0xff]  ;;  %v615_v58 = vpack.c.bf16 %v73_v53, %v72_v52  ;;  %v42_v59 = vld [vmem:[%s1016_s1 + $0x60] sm:$0xff]  ;;  %v591_v60 = vpack.c.bf16 %v59_v56, %v58_v55  ;;  %v43_v61 = vld [vmem:[%s1016_s1 + $0x68] sm:$0xff] }
   0xf   :  { %608 = vmatprep.subr.bf16.mxu1 %v677_v2  ;;  %425 = vmatprep.mubr.msk.f32.mxu1 %vm87_vm0, %v29_v54  ;;  %v74_v62 = vld [vmem:[%s1016_s1 + $0x160] sm:$0xff]  ;;  %v75_v63 = vld [vmem:[%s1016_s1 + $0x168] sm:$0xff]  ;;  %v60_v0 = vld [vmem:[%s1016_s1 + $0xf0] sm:$0xff]  ;;  %v593_v3 = vpack.c.bf16 %v43_v61, %v42_v59 }
  0x10   :  { %v61_v1 = vld [vmem:[%s1016_s1 + $0xf8] sm:$0xff]  ;;  %v618_v4 = vpack.c.bf16 %v75_v63, %v74_v62  ;;  %v44_v5 = vld [vmem:[%s1016_s1 + $0x70] sm:$0xff]  ;;  %v78_v12 = vld [vmem:[%s1016_s1 + $0x180] sm:$0xff] }
  0x11   :  { %582 = vmatpush3.bf16.msra.mxu0 %v581_v37  ;;  %v595_v6 = vpack.c.bf16 %v61_v1, %v60_v0  ;;  %v45_v7 = vld [vmem:[%s1016_s1 + $0x78] sm:$0xff]  ;;  %v76_v8 = vld [vmem:[%s1016_s1 + $0x170] sm:$0xff]  ;;  %v79_v13 = vld [vmem:[%s1016_s1 + $0x188] sm:$0xff] }
  0x12   :  { %610 = vmatpush1.bf16.msra.mxu1 %v609_v38  ;;  %584 = vmatprep.subr.bf16.mxu0 %v583_v40  ;;  %v77_v9 = vld [vmem:[%s1016_s1 + $0x178] sm:$0xff]  ;;  %v597_v10 = vpack.c.bf16 %v45_v7, %v44_v5  ;;  %v232_v14 = vld [vmem:[%s1018_s3] sm:$0xff]  ;;  %v233_v15 = vld [vmem:[%s1018_s3 + $0x8] sm:$0xff]  ;;  %v624_v17 = vpack.c.bf16 %v79_v13, %v78_v12 }
  0x13   :  { %611 = vmatprep.subr.bf16.mxu1 %v677_v2  ;;  %v621_v11 = vpack.c.bf16 %v77_v9, %v76_v8  ;;  %v26_v16 = vld [vmem:[%s1017_s0] sm:$0xff]  ;;  %v627_v18 = vpack.c.bf16 %v233_v15, %v232_v14  ;;  %v234_v19 = vld [vmem:[%s1018_s3 + $0x10] sm:$0xff]  ;;  %v235_v20 = vld [vmem:[%s1018_s3 + $0x18] sm:$0xff] }
  0x14   :  { %v28_v21 = vld [vmem:[%s1017_s0 + $0x10] sm:$0xff]  ;;  %v630_v22 = vpack.c.bf16 %v235_v20, %v234_v19  ;;  %v236_v23 = vld [vmem:[%s1018_s3 + $0x20] sm:$0xff]  ;;  %v237_v24 = vld [vmem:[%s1018_s3 + $0x28] sm:$0xff] }
  0x15   :  { %586 = vmatpush3.bf16.msra.mxu0 %v585_v46  ;;  %v633_v25 = vpack.c.bf16 %v237_v24, %v236_v23  ;;  %v238_v26 = vld [vmem:[%s1018_s3 + $0x30] sm:$0xff]  ;;  %v239_v27 = vld [vmem:[%s1018_s3 + $0x38] sm:$0xff]  ;;  %v240_v29 = vld [vmem:[%s1018_s3 + $0x40] sm:$0xff] }
  0x16   :  { %613 = vmatpush1.bf16.msra.mxu1 %v612_v47  ;;  %588 = vmatprep.subr.bf16.mxu0 %v587_v51  ;;  %v636_v28 = vpack.c.bf16 %v239_v27, %v238_v26  ;;  %v241_v30 = vld [vmem:[%s1018_s3 + $0x48] sm:$0xff]  ;;  %v242_v32 = vld [vmem:[%s1018_s3 + $0x50] sm:$0xff]  ;;  %v243_v33 = vld [vmem:[%s1018_s3 + $0x58] sm:$0xff] }
  0x17   :  { %614 = vmatprep.subr.bf16.mxu1 %v677_v2  ;;  %v639_v31 = vpack.c.bf16 %v241_v30, %v240_v29  ;;  %v642_v34 = vpack.c.bf16 %v243_v33, %v242_v32  ;;  %v244_v35 = vld [vmem:[%s1018_s3 + $0x60] sm:$0xff]  ;;  %v245_v36 = vld [vmem:[%s1018_s3 + $0x68] sm:$0xff]  ;;  %v246_v38 = vld [vmem:[%s1018_s3 + $0x70] sm:$0xff] }
  0x18   :  { %v645_v37 = vpack.c.bf16 %v245_v36, %v244_v35  ;;  %v247_v39 = vld [vmem:[%s1018_s3 + $0x78] sm:$0xff]  ;;  %v326_v42 = vld [vmem:[%s1019_s5] sm:$0xff]  ;;  %v327_v43 = vld [vmem:[%s1019_s5 + $0x8] sm:$0xff] }
  0x19   :  { %590 = vmatpush3.bf16.msra.mxu0 %v589_v57  ;;  %v648_v40 = vpack.c.bf16 %v247_v39, %v246_v38  ;;  %v328_v44 = vld [vmem:[%s1019_s5 + $0x10] sm:$0xff]  ;;  %v651_v45 = vpack.c.bf16 %v327_v43, %v326_v42  ;;  %v329_v46 = vld [vmem:[%s1019_s5 + $0x18] sm:$0xff]  ;;  %v330_v48 = vld [vmem:[%s1019_s5 + $0x20] sm:$0xff] }
  0x1a   :  { %616 = vmatpush1.bf16.msra.mxu1 %v615_v58  ;;  %592 = vmatprep.subr.bf16.mxu0 %v591_v60  ;;  %v654_v47 = vpack.c.bf16 %v329_v46, %v328_v44  ;;  %v331_v49 = vld [vmem:[%s1019_s5 + $0x28] sm:$0xff]  ;;  %v332_v51 = vld [vmem:[%s1019_s5 + $0x30] sm:$0xff]  ;;  %v333_v52 = vld [vmem:[%s1019_s5 + $0x38] sm:$0xff] }
  0x1b   :  { %617 = vmatprep.subr.bf16.mxu1 %v677_v2  ;;  %v657_v50 = vpack.c.bf16 %v331_v49, %v330_v48  ;;  %v660_v53 = vpack.c.bf16 %v333_v52, %v332_v51  ;;  %v334_v54 = vld [vmem:[%s1019_s5 + $0x40] sm:$0xff]  ;;  %v335_v55 = vld [vmem:[%s1019_s5 + $0x48] sm:$0xff]  ;;  %v336_v57 = vld [vmem:[%s1019_s5 + $0x50] sm:$0xff] }
  0x1c   :  { %v663_v56 = vpack.c.bf16 %v335_v55, %v334_v54  ;;  %v337_v58 = vld [vmem:[%s1019_s5 + $0x58] sm:$0xff]  ;;  %v338_v60 = vld [vmem:[%s1019_s5 + $0x60] sm:$0xff]  ;;  %v339_v61 = vld [vmem:[%s1019_s5 + $0x68] sm:$0xff] }
  0x1d   :  { %594 = vmatpush3.bf16.msra.mxu0 %v593_v3  ;;  %v666_v59 = vpack.c.bf16 %v337_v58, %v336_v57  ;;  %v669_v62 = vpack.c.bf16 %v339_v61, %v338_v60  ;;  %v424_v1 = vld [vmem:[%s1020_s2] ss:$0 sm:$0xff]  ;;  %v340_v9 = vld [vmem:[%s1019_s5 + $0x70] sm:$0xff] }
  0x1e   :  { %619 = vmatpush1.bf16.msra.mxu1 %v618_v4  ;;  %596 = vmatprep.subr.bf16.mxu0 %v595_v6 }
  0x1f   :  { %620 = vmatprep.subr.bf16.mxu1 %v677_v2 }
  0x21   :  { %598 = vmatpush3.bf16.msra.mxu0 %v597_v10 }
  0x22   :  { %622 = vmatpush1.bf16.msra.mxu1 %v621_v11  ;;  %626 = vmatprep.subr.bf16.mxu0 %v677_v2  ;;  %v426_v11 = vld [vmem:[%s1021_s4] ss:$0 sm:$0xff] }
  0x23   :  { %623 = vmatprep.subr.bf16.mxu1 %v677_v2 }
  0x24   :  { %156 = vmatmul.mubr.f32.vlgmr.msra.gmra.mrb[0].mxu0 %v26_v16  ;;  %v427_v16 = vld [vmem:[%s1022_s6] ss:$0 sm:$0xff] }
  0x25   :  { %628 = vmatpush3.bf16.msra.mxu0 %v627_v18  ;;  %529 = vmatprep.mubr.msk.f32.mxu0 %vm678_vm1, %v679_v41 }
  0x26   :  { %625 = vmatpush1.bf16.msra.mxu1 %v624_v17  ;;  %629 = vmatprep.subr.bf16.mxu0 %v677_v2 }
  0x27   :  { %650 = vmatprep.subr.bf16.mxu1 %v677_v2 }
  0x29   :  { %226 = vmatmul.mubr.f32.vlgmr.msra.gmra.mrb[0].mxu1 %v28_v21  ;;  %631 = vmatpush3.bf16.msra.mxu0 %v630_v22 }
  0x2a   :  { %632 = vmatprep.subr.bf16.mxu0 %v677_v2  ;;  %564 = vmatprep.mubr.msk.f32.mxu1 %vm678_vm1, %v679_v41 }
  0x2b   :  { %652 = vmatpush3.bf16.msra.mxu1 %v651_v45 }
  0x2c   :  { %653 = vmatprep.subr.bf16.mxu1 %v677_v2 }
  0x2d   :  { %634 = vmatpush3.bf16.msra.mxu0 %v633_v25 }
  0x2e   :  { %635 = vmatprep.subr.bf16.mxu0 %v677_v2 }
  0x2f   :  { %655 = vmatpush3.bf16.msra.mxu1 %v654_v47 }
  0x30   :  { %656 = vmatprep.subr.bf16.mxu1 %v677_v2 }
  0x31   :  { %637 = vmatpush3.bf16.msra.mxu0 %v636_v28 }
  0x32   :  { %638 = vmatprep.subr.bf16.mxu0 %v677_v2 }
  0x33   :  { %658 = vmatpush3.bf16.msra.mxu1 %v657_v50 }
  0x34   :  { %659 = vmatprep.subr.bf16.mxu1 %v677_v2 }
  0x35   :  { %640 = vmatpush3.bf16.msra.mxu0 %v639_v31 }
  0x36   :  { %641 = vmatprep.subr.bf16.mxu0 %v677_v2 }
  0x37   :  { %661 = vmatpush3.bf16.msra.mxu1 %v660_v53 }
  0x38   :  { %662 = vmatprep.subr.bf16.mxu1 %v677_v2 }
  0x39   :  { %643 = vmatpush3.bf16.msra.mxu0 %v642_v34 }
  0x3a   :  { %644 = vmatprep.subr.bf16.mxu0 %v677_v2 }
  0x3b   :  { %664 = vmatpush3.bf16.msra.mxu1 %v663_v56 }
  0x3c   :  { %665 = vmatprep.subr.bf16.mxu1 %v677_v2 }
  0x3d   :  { %646 = vmatpush3.bf16.msra.mxu0 %v645_v37 }
  0x3e   :  { %647 = vmatprep.subr.bf16.mxu0 %v677_v2 }
  0x3f   :  { %667 = vmatpush3.bf16.msra.mxu1 %v666_v59 }
  0x40   :  { %668 = vmatprep.subr.bf16.mxu1 %v677_v2 }
  0x41   :  { %649 = vmatpush3.bf16.msra.mxu0 %v648_v40 }
  0x43   :  { %670 = vmatpush3.bf16.msra.mxu1 %v669_v62 }
  0x44   :  { %671 = vmatprep.subr.bf16.mxu1 %v677_v2  ;;  %v341_v2 = vld [vmem:[%s1019_s5 + $0x78] sm:$0xff] }
  0x45   :  { %v672_v10 = vpack.c.bf16 %v341_v2, %v340_v9 }
  0x47   :  { %673 = vmatpush3.bf16.msra.mxu1 %v672_v10 }
  0xf7   :  { %v460_v63 = vpop.f32.mrb[0].mxu0 }
  0xf8   :  { %v461_v0 = vpop.f32.mrb[1].mxu0 }
  0xf9   :  { %v462_v3 = vadd.f32 %v461_v0, %v460_v63 }
  0xfb   :  { %v158_v4 = vadd.f32 %v462_v3, %v424_v1 }
  0xfc   :  { %v227_v5 = vpop.f32.mrb[0].mxu1 }
  0xfd   :  { %v229_v6 = vpop.f32.mrb[1].mxu1  ;;  %v228_v7 = vadd.f32 %v227_v5, %v158_v4 }
  0xff   :  { %v231_v8 = vmax.f32 %v228_v7, 0.0 }
 0x101   :  { %530 = vmatmul.mubr.f32.vlgmr.msra.gmra.mrb[2].mxu0 %v231_v8 }
 0x1d4   :  { %v321_v12 = vpop.f32.mrb[2].mxu0 }
 0x1d5   :  { %v322_v13 = vadd.f32 %v426_v11, %v321_v12  ;;  %v531_v14 = vpop.f32.mrb[3].mxu0 }
 0x1d7   :  { %v325_v15 = vmax.f32 %v322_v13, 0.0 }
 0x1d9   :  { %565 = vmatmul.mubr.f32.vlgmr.msra.gmra.mrb[2].mxu1 %v325_v15 }
 0x2ac   :  { %v415_v17 = vpop.f32.mrb[2].mxu1 }
 0x2ad   :  { %v416_v18 = vadd.f32 %v427_v16, %v415_v17  ;;  %v566_v19 = vpop.f32.mrb[3].mxu1 }
 0x2af   :  { %419 = vst [vmem:[%s1023_s7] sm:$0xff] %v416_v18 }

</bundles_post_ra>
